<compile_context>
chip_gen: v6e
topology: v6e:2x2x1
jax: 0.10.0
libtpu: 0.0.40
codegen_flags: <defaults>
</compile_context>

<pallas_src>
import functools

import jax
import jax.numpy as jnp
from jax import lax
from jax.experimental import pallas as pl
from jax.experimental.pallas import tpu as pltpu


# ----------------------------------------------------------------------------
# Pass 1: online softmax of k over N + context accumulation, folded with w_out.
# ----------------------------------------------------------------------------
def _context_kernel(x_ref, wkv_ref, wout_ref, mask_ref, weff_ref,
                    m_sc, z_sc, acc_sc, *, hid, block_n, n_valid, n_total,
                    mm_dtype):
    """acc[d, e] = sum_n exp(k[d,n]-m) * v[e, n]; finalize -> w_out @ ctx^T."""
    t = pl.program_id(1)

    @pl.when(t == 0)
    def _init():
        m_sc[...] = jnp.full_like(m_sc, -jnp.inf)
        z_sc[...] = jnp.zeros_like(z_sc)
        acc_sc[...] = jnp.zeros_like(acc_sc)

    x = x_ref[0].astype(mm_dtype)                                   # (C, TN)
    kv = jnp.dot(wkv_ref[...].astype(mm_dtype), x,
                 preferred_element_type=jnp.float32)                # (2*hid, TN)
    k = kv[:hid]                                                    # (hid, TN)
    v = kv[hid:]                                                    # (hid, TN)

    if n_valid != n_total:
        # Zero-padded tokens must not contribute to softmax_n(k).
        col = t * block_n + lax.broadcasted_iota(jnp.int32, (1, block_n), 1)
        k = jnp.where(col < n_valid, k, -1e30)

    m_prev = m_sc[...]                                              # (hid, 1)
    m_new = jnp.maximum(m_prev, jnp.max(k, axis=-1, keepdims=True))
    alpha = jnp.exp(m_prev - m_new)                                 # (hid, 1)
    p = jnp.exp(k - m_new)                                          # (hid, TN)
    z_sc[...] = alpha * z_sc[...] + jnp.sum(p, axis=-1, keepdims=True)
    # acc[d, e] += sum_n p[d, n] * v[e, n]   (A @ B^T on the MXU).
    # NOTE: with block_n >= 2048 the alpha rescale is a small fraction of the
    # per-tile work, so it is left ungated.
    acc_sc[...] = alpha * acc_sc[...] + lax.dot_general(
        p.astype(mm_dtype), v.astype(mm_dtype),
        dimension_numbers=(((1,), (1,)), ((), ())),
        preferred_element_type=jnp.float32)
    m_sc[...] = m_new

    @pl.when(t == pl.num_programs(1) - 1)
    def _finalize():
        # Exact reciprocal: only (hid, 1) elements, essentially free.
        ctx = acc_sc[...] * (1.0 / z_sc[...]) * mask_ref[...]       # (hid, hid)
        # Fold to_out into the context: w_eff[o, d] = sum_e w_out[o, e]*ctx[d, e]
        weff_ref[0] = lax.dot_general(
            wout_ref[...], ctx,
            dimension_numbers=(((1,), (1,)), ((), ())),
            preferred_element_type=jnp.float32)                     # (C, hid)


# ----------------------------------------------------------------------------
# Pass 2: per-token-tile per-head q softmax, folded projection, RMSNorm.
# ----------------------------------------------------------------------------
def _apply_kernel(weff_ref, x_ref, wq_ref, bout_ref, g_ref, o_ref,
                  *, heads, dim_head, dim, mm_dtype):
    scale = float(dim_head) ** -0.5

    x = x_ref[0].astype(mm_dtype)                                   # (C, TN)
    q = jnp.dot(wq_ref[...].astype(mm_dtype), x,
                preferred_element_type=jnp.float32)                 # (hid, TN)
    tn = q.shape[-1]

    # Per-head softmax over dim_head rows, per token (lane). dim_head is a
    # multiple of 8, so this reshape is tile-aligned (no relayout).
    q3 = q.reshape(heads, dim_head, tn)
    m_h = jnp.max(q3, axis=1, keepdims=True)                        # (h, 1, TN)
    eq = jnp.exp(q3 - m_h)                                          # (h, dh, TN)
    denom = jnp.sum(eq, axis=1, keepdims=True)                      # >= 1 always
    q_soft = (eq * pl.reciprocal(denom, approx=True) * scale
              ).reshape(heads * dim_head, tn)                       # (hid, TN)

    # Folded projection: y = (w_out @ ctx^T) @ q_soft + b_out.
    y = jnp.dot(weff_ref[0].astype(mm_dtype), q_soft.astype(mm_dtype),
                preferred_element_type=jnp.float32) + bout_ref[...]  # (C, TN)

    # RMSNorm over channels per token (matches F.normalize eps=1e-12).
    ss = jnp.sum(y * y, axis=0, keepdims=True)                      # (1, TN)
    inv = lax.rsqrt(jnp.maximum(ss, 1e-24))
    o_ref[0] = (y * inv * g_ref[...] * (float(dim) ** 0.5)).astype(o_ref.dtype)


# ----------------------------------------------------------------------------
# Wrapper
# ----------------------------------------------------------------------------
def linear_attention_pallas(x_nchw, w_qkv, w_out, b_out, g, *, heads, dim_head,
                            block_n=None, mm_dtype=jnp.bfloat16):
    b, c, H, W = x_nchw.shape
    n = H * W
    hid = heads * dim_head
    assert dim_head % 8 == 0, "dim_head must be a multiple of 8"

    # Lane-dense layout: NCHW -> (B, C, N) is a pure reshape (no transpose).
    # x stays in its input dtype in HBM; kernels cast after the block load.
    x = x_nchw.reshape(b, c, n)

    if block_n is None:
        base = -(-n // 128) * 128
        block_n = 128
        # Bigger tiles amortize per-grid-step overhead; 2048 stays inside the
        # VMEM budget on every generation (incl. v7x's 64 MiB).
        for cand in (2048, 1024, 512, 256):
            if base % cand == 0:
                block_n = cand
                break
    n_pad = -(-n // block_n) * block_n
    if n_pad != n:
        x = jnp.pad(x, ((0, 0), (0, 0), (0, n_pad - n)))
    num_tiles = n_pad // block_n

    wqkv = jnp.reshape(w_qkv, (3 * hid, c))
    w_q = wqkv[:hid].astype(mm_dtype)               # (hid, C)
    w_kv = wqkv[hid:].astype(mm_dtype)              # (2*hid, C): k rows then v
    wout = jnp.reshape(w_out, (c, hid)).astype(jnp.float32)
    bout = jnp.reshape(b_out, (c, 1)).astype(jnp.float32)
    g2 = jnp.reshape(g, (c, 1)).astype(jnp.float32)

    # Static block-diagonal head mask (hid, hid); only used in pass-1 finalize.
    head_ids = jnp.arange(hid, dtype=jnp.int32) // dim_head
    mask = (head_ids[:, None] == head_ids[None, :]).astype(jnp.float32)

    x_bytes = jnp.dtype(x.dtype).itemsize
    o_bytes = jnp.dtype(x_nchw.dtype).itemsize
    # VMEM limit proportional to the actual tile footprint, clamped so we never
    # over-request on v7x (64 MiB VMEM) while leaving room for larger tiles.
    tile_bytes = (4 * c * block_n * max(x_bytes, o_bytes)   # dbl-buffered I/O
                  + 8 * hid * block_n * 4                   # f32 intermediates
                  + 3 * hid * hid * 4                       # acc / ctx / mask
                  + 4 * hid * c * 4)                        # resident weights
    vmem_limit = int(min(max(2 * tile_bytes, 32 * 1024 * 1024),
                         64 * 1024 * 1024))

    # Pass 1: per-batch folded context w_eff (C, hid), reduced over token tiles.
    weff = pl.pallas_call(
        functools.partial(_context_kernel, hid=hid, block_n=block_n,
                          n_valid=n, n_total=n_pad, mm_dtype=mm_dtype),
        out_shape=jax.ShapeDtypeStruct((b, c, hid), jnp.float32),
        grid=(b, num_tiles),
        in_specs=[
            pl.BlockSpec((1, c, block_n), lambda i, t: (i, 0, t)),
            pl.BlockSpec((2 * hid, c), lambda i, t: (0, 0)),
            pl.BlockSpec((c, hid), lambda i, t: (0, 0)),
            pl.BlockSpec((hid, hid), lambda i, t: (0, 0)),
        ],
        out_specs=pl.BlockSpec((1, c, hid), lambda i, t: (i, 0, 0)),
        scratch_shapes=[
            pltpu.VMEM((hid, 1), jnp.float32),    # running max of k rows
            pltpu.VMEM((hid, 1), jnp.float32),    # running sum-exp of k rows
            pltpu.VMEM((hid, hid), jnp.float32),  # context accumulator
        ],
        compiler_params=pltpu.CompilerParams(
            dimension_semantics=("parallel", "arbitrary"),
            vmem_limit_bytes=vmem_limit),
        cost_estimate=pl.CostEstimate(
            flops=2 * b * n_pad * (2 * hid * c + hid * hid)
                  + 2 * b * c * hid * hid,
            transcendentals=b * n_pad * hid,
            bytes_accessed=(b * c * n_pad * x_bytes
                            + (3 * hid * c + hid * hid + c * hid) * 4
                            + b * c * hid * 4)),
    )(x, w_kv, wout, mask)

    # Pass 2: q softmax + folded projection + RMSNorm per token tile.
    out = pl.pallas_call(
        functools.partial(_apply_kernel, heads=heads, dim_head=dim_head,
                          dim=c, mm_dtype=mm_dtype),
        out_shape=jax.ShapeDtypeStruct((b, c, n_pad), x_nchw.dtype),
        grid=(b, num_tiles),
        in_specs=[
            pl.BlockSpec((1, c, hid), lambda i, t: (i, 0, 0)),
            pl.BlockSpec((1, c, block_n), lambda i, t: (i, 0, t)),
            pl.BlockSpec((hid, c), lambda i, t: (0, 0)),
            pl.BlockSpec((c, 1), lambda i, t: (0, 0)),
            pl.BlockSpec((c, 1), lambda i, t: (0, 0)),
        ],
        out_specs=pl.BlockSpec((1, c, block_n), lambda i, t: (i, 0, t)),
        compiler_params=pltpu.CompilerParams(
            dimension_semantics=("parallel", "parallel"),
            vmem_limit_bytes=vmem_limit),
        cost_estimate=pl.CostEstimate(
            flops=2 * b * n_pad * (hid * c + c * hid),
            transcendentals=b * n_pad * hid,
            bytes_accessed=(b * c * n_pad * (x_bytes + o_bytes)
                            + b * c * hid * 4 + hid * c * 4 + 2 * c * 4)),
    )(weff, x, w_q, bout, g2)

    if n_pad != n:
        out = out[:, :, :n]
    return out.reshape(b, c, H, W)


# ----------------------------------------------------------------------------
# Pure-JAX reference replicating the PyTorch module semantics (f32).
# ----------------------------------------------------------------------------
def linear_attention_ref(x_nchw, w_qkv, w_out, b_out, g, *, heads, dim_head):
    b, c, H, W = x_nchw.shape
    n = H * W
    hid = heads * dim_head
    scale = dim_head ** (-0.5)

    wq = jnp.reshape(w_qkv, (3 * hid, c))
    qkv = jnp.einsum('oc,bcxy->boxy', wq, x_nchw)
    q, k, v = jnp.split(qkv, 3, axis=1)

    def to_bhdn(t):
        return t.reshape(b, heads, dim_head, n)

    q, k, v = map(to_bhdn, (q, k, v))
    q = jax.nn.softmax(q, axis=-2)
    k = jax.nn.softmax(k, axis=-1)
    q = q * scale
    context = jnp.einsum('bhdn,bhen->bhde', k, v)
    out = jnp.einsum('bhde,bhdn->bhen', context, q)
    out = out.reshape(b, hid, H, W)

    wo = jnp.reshape(w_out, (c, hid))
    y = jnp.einsum('oe,bexy->boxy', wo, out) + b_out.reshape(1, c, 1, 1)
    norm = jnp.sqrt(jnp.sum(y * y, axis=1, keepdims=True))
    y = y / jnp.maximum(norm, 1e-12)
    return y * g.reshape(1, c, 1, 1) * jnp.sqrt(jnp.float32(c))


if __name__ == "__main__":
    # Module config: dim=4, heads=4, dim_head=32 -> hidden=128
    dim, heads, dim_head = 4, 4, 32
    hid = heads * dim_head
    B, H, W = 2, 16, 16

    key = jax.random.PRNGKey(0)
    kx, kq, ko, kb = jax.random.split(key, 4)

    x = jax.random.normal(kx, (B, dim, H, W), dtype=jnp.float32)
    w_qkv = 0.1 * jax.random.normal(kq, (3 * hid, dim, 1, 1), dtype=jnp.float32)
    w_out = 0.1 * jax.random.normal(ko, (dim, hid, 1, 1), dtype=jnp.float32)
    b_out = 0.1 * jax.random.normal(kb, (dim,), dtype=jnp.float32)
    g = jnp.ones((1, dim, 1, 1), dtype=jnp.float32)   # RMSNorm scale

    ref = jax.block_until_ready(
        linear_attention_ref(x, w_qkv, w_out, b_out, g,
                             heads=heads, dim_head=dim_head))

    # f32 MXU path (tight numeric check of the kernel structure).
    out_f32 = jax.block_until_ready(
        linear_attention_pallas(x, w_qkv, w_out, b_out, g,
                                heads=heads, dim_head=dim_head,
                                mm_dtype=jnp.float32))
    assert out_f32.shape == (B, dim, H, W)
    assert jnp.allclose(out_f32, ref, rtol=5e-3, atol=5e-3), (
        float(jnp.max(jnp.abs(out_f32 - ref))))

    # bf16 MXU path (production config).
    out_bf16 = jax.block_until_ready(
        linear_attention_pallas(x, w_qkv, w_out, b_out, g,
                                heads=heads, dim_head=dim_head,
                                mm_dtype=jnp.bfloat16))
    assert out_bf16.shape == (B, dim, H, W)
    assert jnp.allclose(out_bf16, ref, rtol=5e-2, atol=5e-2), (
        float(jnp.max(jnp.abs(out_bf16 - ref))))

    # Non-128-aligned spatial size exercises the padded / masked token path.
    Hs, Ws = 10, 10
    xs = jax.random.normal(kx, (B, dim, Hs, Ws), dtype=jnp.float32)
    ref_s = jax.block_until_ready(
        linear_attention_ref(xs, w_qkv, w_out, b_out, g,
                             heads=heads, dim_head=dim_head))
    out_s = jax.block_until_ready(
        linear_attention_pallas(xs, w_qkv, w_out, b_out, g,
                                heads=heads, dim_head=dim_head,
                                mm_dtype=jnp.float32))
    assert out_s.shape == (B, dim, Hs, Ws)
    assert jnp.allclose(out_s, ref_s, rtol=5e-3, atol=5e-3), (
        float(jnp.max(jnp.abs(out_s - ref_s))))

    print("KERNEL_OK")
</pallas_src>

<mosaic_0001>
module attributes {stable_mosaic.version = 11 : i64} {
  func.func @_context_kernel(%arg0: i32, %arg1: i32, %arg2: memref<1x4x256xf32, #tpu.memory_space<vmem>>, %arg3: memref<256x4xf32, #tpu.memory_space<vmem>>, %arg4: memref<4x128xf32, #tpu.memory_space<vmem>>, %arg5: memref<128x128xf32, #tpu.memory_space<vmem>>, %arg6: memref<1x4x128xf32, #tpu.memory_space<vmem>>, %arg7: memref<128x1xf32, #tpu.memory_space<vmem>>, %arg8: memref<128x1xf32, #tpu.memory_space<vmem>>, %arg9: memref<128x128xf32, #tpu.memory_space<vmem>>) attributes {dimension_semantics = [#tpu.dimension_semantics<parallel>, #tpu.dimension_semantics<arbitrary>], iteration_bounds = array<i64: 2, 1>, scalar_prefetch = 0 : i64, scratch_operands = 3 : i64, tpu.core_type = #tpu.core_type<tc>, window_params = [{transform_indices = @transform_0, window_bounds = array<i64: 1, 4, 256>}, {pipeline_mode = #tpu.pipeline_mode<synchronous>, transform_indices = @transform_1, window_bounds = array<i64: 256, 4>}, {pipeline_mode = #tpu.pipeline_mode<synchronous>, transform_indices = @transform_2, window_bounds = array<i64: 4, 128>}, {pipeline_mode = #tpu.pipeline_mode<synchronous>, transform_indices = @transform_3, window_bounds = array<i64: 128, 128>}, {transform_indices = @transform_4, window_bounds = array<i64: 1, 4, 128>}]} {
    %c0_i32 = arith.constant 0 : i32
    %0 = arith.cmpi eq, %arg1, %c0_i32 : i32
    %1 = arith.extui %0 : i1 to i32
    %c0_i32_0 = arith.constant 0 : i32
    %2 = arith.cmpi ne, %1, %c0_i32_0 : i32
    scf.if %2 {
      %cst_22 = arith.constant 0xFF800000 : f32
      %34 = vector.broadcast %cst_22 : f32 to vector<128x1xf32>
      %c0_23 = arith.constant 0 : index
      %c0_24 = arith.constant 0 : index
      %35 = vector.load %arg7[%c0_23, %c0_24] : memref<128x1xf32, #tpu.memory_space<vmem>>, vector<128x1xf32>
      tpu.vector_store %arg7[%c0_23, %c0_24], %34 {strides = array<i32>} : memref<128x1xf32, #tpu.memory_space<vmem>>, vector<128x1xf32>,
      %cst_25 = arith.constant 0.000000e+00 : f32
      %36 = vector.broadcast %cst_25 : f32 to vector<128x1xf32>
      %c0_26 = arith.constant 0 : index
      %c0_27 = arith.constant 0 : index
      %37 = vector.load %arg8[%c0_26, %c0_27] : memref<128x1xf32, #tpu.memory_space<vmem>>, vector<128x1xf32>
      tpu.vector_store %arg8[%c0_26, %c0_27], %36 {strides = array<i32>} : memref<128x1xf32, #tpu.memory_space<vmem>>, vector<128x1xf32>,
      %cst_28 = arith.constant 0.000000e+00 : f32
      %38 = vector.broadcast %cst_28 : f32 to vector<128x128xf32>
      %c0_29 = arith.constant 0 : index
      %c0_30 = arith.constant 0 : index
      %39 = vector.load %arg9[%c0_29, %c0_30] : memref<128x128xf32, #tpu.memory_space<vmem>>, vector<128x128xf32>
      tpu.vector_store %arg9[%c0_29, %c0_30], %38 {strides = array<i32>} : memref<128x128xf32, #tpu.memory_space<vmem>>, vector<128x128xf32>,
    } else {
    }
    %c0 = arith.constant 0 : index
    %c0_1 = arith.constant 0 : index
    %c0_2 = arith.constant 0 : index
    %3 = vector.load %arg2[%c0, %c0_1, %c0_2] : memref<1x4x256xf32, #tpu.memory_space<vmem>>, vector<1x4x256xf32>
    %4 = vector.shape_cast %3 : vector<1x4x256xf32> to vector<4x256xf32>
    %c0_3 = arith.constant 0 : index
    %c0_4 = arith.constant 0 : index
    %5 = vector.load %arg3[%c0_3, %c0_4] : memref<256x4xf32, #tpu.memory_space<vmem>>, vector<256x4xf32>
    %cst = arith.constant dense<0.000000e+00> : vector<256x256xf32>
    %6 = tpu.matmul %5, %4, %cst {dimension_numbers = #tpu.dot_dimension_numbers<[1], [0], [0], [1], [0, 0, 1, 1], [], []>} : vector<256x4xf32>, vector<4x256xf32>, vector<256x256xf32> -> vector<256x256xf32>
    %7 = vector.extract_strided_slice %6 {offsets = [0, 0], sizes = [128, 256], strides = [1, 1]} : vector<256x256xf32> to vector<128x256xf32>
    %8 = vector.extract_strided_slice %6 {offsets = [128, 0], sizes = [128, 256], strides = [1, 1]} : vector<256x256xf32> to vector<128x256xf32>
    %c0_5 = arith.constant 0 : index
    %c0_6 = arith.constant 0 : index
    %9 = vector.load %arg7[%c0_5, %c0_6] : memref<128x1xf32, #tpu.memory_space<vmem>>, vector<128x1xf32>
    %cst_7 = arith.constant dense<0xFF800000> : vector<128xf32>
    %10 = vector.multi_reduction <maximumf>, %7, %cst_7 [1] : vector<128x256xf32> to vector<128xf32>
    %11 = vector.shape_cast %10 : vector<128xf32> to vector<128x1xf32>
    %12 = arith.maximumf %9, %11 : vector<128x1xf32>
    %13 = arith.subf %9, %12 : vector<128x1xf32>
    %14 = math.exp %13 : vector<128x1xf32>
    %15 = vector.broadcast %12 : vector<128x1xf32> to vector<128x256xf32>
    %16 = arith.subf %7, %15 : vector<128x256xf32>
    %17 = math.exp %16 : vector<128x256xf32>
    %c0_8 = arith.constant 0 : index
    %c0_9 = arith.constant 0 : index
    %18 = vector.load %arg8[%c0_8, %c0_9] : memref<128x1xf32, #tpu.memory_space<vmem>>, vector<128x1xf32>
    %19 = arith.mulf %14, %18 : vector<128x1xf32>
    %cst_10 = arith.constant dense<0.000000e+00> : vector<128xf32>
    %20 = vector.multi_reduction <add>, %17, %cst_10 [1] : vector<128x256xf32> to vector<128xf32>
    %21 = vector.shape_cast %20 : vector<128xf32> to vector<128x1xf32>
    %22 = arith.addf %19, %21 : vector<128x1xf32>
    %c0_11 = arith.constant 0 : index
    %c0_12 = arith.constant 0 : index
    %23 = vector.load %arg8[%c0_11, %c0_12] : memref<128x1xf32, #tpu.memory_space<vmem>>, vector<128x1xf32>
    tpu.vector_store %arg8[%c0_11, %c0_12], %22 {strides = array<i32>} : memref<128x1xf32, #tpu.memory_space<vmem>>, vector<128x1xf32>,
    %c0_13 = arith.constant 0 : index
    %c0_14 = arith.constant 0 : index
    %24 = vector.load %arg9[%c0_13, %c0_14] : memref<128x128xf32, #tpu.memory_space<vmem>>, vector<128x128xf32>
    %25 = vector.broadcast %14 : vector<128x1xf32> to vector<128x128xf32>
    %26 = arith.mulf %25, %24 : vector<128x128xf32>
    %cst_15 = arith.constant dense<0.000000e+00> : vector<128x128xf32>
    %27 = tpu.matmul %17, %8, %cst_15 {dimension_numbers = #tpu.dot_dimension_numbers<[1], [1], [0], [0], [0, 0, 1, 0], [], []>} : vector<128x256xf32>, vector<128x256xf32>, vector<128x128xf32> -> vector<128x128xf32>
    %28 = arith.addf %26, %27 : vector<128x128xf32>
    %c0_16 = arith.constant 0 : index
    %c0_17 = arith.constant 0 : index
    %29 = vector.load %arg9[%c0_16, %c0_17] : memref<128x128xf32, #tpu.memory_space<vmem>>, vector<128x128xf32>
    tpu.vector_store %arg9[%c0_16, %c0_17], %28 {strides = array<i32>} : memref<128x128xf32, #tpu.memory_space<vmem>>, vector<128x128xf32>,
    %c0_18 = arith.constant 0 : index
    %c0_19 = arith.constant 0 : index
    %30 = vector.load %arg7[%c0_18, %c0_19] : memref<128x1xf32, #tpu.memory_space<vmem>>, vector<128x1xf32>
    tpu.vector_store %arg7[%c0_18, %c0_19], %12 {strides = array<i32>} : memref<128x1xf32, #tpu.memory_space<vmem>>, vector<128x1xf32>,
    %c0_i32_20 = arith.constant 0 : i32
    %31 = arith.cmpi eq, %arg1, %c0_i32_20 : i32
    %32 = arith.extui %31 : i1 to i32
    %c0_i32_21 = arith.constant 0 : i32
    %33 = arith.cmpi ne, %32, %c0_i32_21 : i32
    scf.if %33 {
      %c0_22 = arith.constant 0 : index
      %c0_23 = arith.constant 0 : index
      %34 = vector.load %arg9[%c0_22, %c0_23] : memref<128x128xf32, #tpu.memory_space<vmem>>, vector<128x128xf32>
      %c0_24 = arith.constant 0 : index
      %c0_25 = arith.constant 0 : index
      %35 = vector.load %arg8[%c0_24, %c0_25] : memref<128x1xf32, #tpu.memory_space<vmem>>, vector<128x1xf32>
      %cst_26 = arith.constant 1.000000e+00 : f32
      %36 = vector.broadcast %cst_26 : f32 to vector<128x1xf32>
      %37 = arith.divf %36, %35 : vector<128x1xf32>
      %38 = vector.broadcast %37 : vector<128x1xf32> to vector<128x128xf32>
      %39 = arith.mulf %34, %38 : vector<128x128xf32>
      %c0_27 = arith.constant 0 : index
      %c0_28 = arith.constant 0 : index
      %40 = vector.load %arg5[%c0_27, %c0_28] : memref<128x128xf32, #tpu.memory_space<vmem>>, vector<128x128xf32>
      %41 = arith.mulf %39, %40 : vector<128x128xf32>
      %c0_29 = arith.constant 0 : index
      %c0_30 = arith.constant 0 : index
      %42 = vector.load %arg4[%c0_29, %c0_30] : memref<4x128xf32, #tpu.memory_space<vmem>>, vector<4x128xf32>
      %cst_31 = arith.constant dense<0.000000e+00> : vector<4x128xf32>
      %43 = tpu.matmul %42, %41, %cst_31 {dimension_numbers = #tpu.dot_dimension_numbers<[1], [1], [0], [0], [0, 0, 1, 0], [], []>} : vector<4x128xf32>, vector<128x128xf32>, vector<4x128xf32> -> vector<4x128xf32>
      %c0_32 = arith.constant 0 : index
      %c0_33 = arith.constant 0 : index
      %c0_34 = arith.constant 0 : index
      %44 = vector.load %arg6[%c0_32, %c0_33, %c0_34] : memref<1x4x128xf32, #tpu.memory_space<vmem>>, vector<1x4x128xf32>
      %45 = vector.shape_cast %44 : vector<1x4x128xf32> to vector<4x128xf32>
      %46 = vector.shape_cast %43 : vector<4x128xf32> to vector<1x4x128xf32>
      tpu.vector_store %arg6[%c0_32, %c0_33, %c0_34], %46 {strides = array<i32>} : memref<1x4x128xf32, #tpu.memory_space<vmem>>, vector<1x4x128xf32>,
    } else {
    }
    return
  }
  func.func @transform_0(%arg0: i32, %arg1: i32) -> (i32, i32, i32) {
    %c0_i32 = arith.constant 0 : i32
    %c0_i32_0 = arith.constant 0 : i32
    return %arg0, %c0_i32, %arg1 : i32, i32, i32
  }
  func.func @transform_1(%arg0: i32, %arg1: i32) -> (i32, i32) {
    %c0_i32 = arith.constant 0 : i32
    %c0_i32_0 = arith.constant 0 : i32
    %c0_i32_1 = arith.constant 0 : i32
    return %c0_i32, %c0_i32_0 : i32, i32
  }
  func.func @transform_2(%arg0: i32, %arg1: i32) -> (i32, i32) {
    %c0_i32 = arith.constant 0 : i32
    %c0_i32_0 = arith.constant 0 : i32
    %c0_i32_1 = arith.constant 0 : i32
    return %c0_i32, %c0_i32_0 : i32, i32
  }
  func.func @transform_3(%arg0: i32, %arg1: i32) -> (i32, i32) {
    %c0_i32 = arith.constant 0 : i32
    %c0_i32_0 = arith.constant 0 : i32
    %c0_i32_1 = arith.constant 0 : i32
    return %c0_i32, %c0_i32_0 : i32, i32
  }
  func.func @transform_4(%arg0: i32, %arg1: i32) -> (i32, i32, i32) {
    %c0_i32 = arith.constant 0 : i32
    %c0_i32_0 = arith.constant 0 : i32
    %c0_i32_1 = arith.constant 0 : i32
    return %arg0, %c0_i32, %c0_i32_0 : i32, i32, i32
  }
}

</mosaic_0001>

<bundles_post_ra>
// kernel: tpu_custom_call.1
= control target key start
LH: loop header
LB: loop body
LE: loop exit
PB: predicated region body
PF: predicated region fallthrough
CT: control target
= control target key end

     0   :  { %9 = vsyncpa [#allocation6], 0  ;;  %s3053_s0 = inlined_call_operand.vmem [shape: f32[2,4,256], index: 0, kind: input, shape index: {}]   ;;  %s3054_s1 = inlined_call_operand.vmem [shape: f32[256,4], index: 1, kind: input, shape index: {}]   ;;  %s3055_s2 = inlined_call_operand.vmem [shape: f32[4,128], index: 2, kind: input, shape index: {}]   ;;  %s3056_s3 = inlined_call_operand.vmem [shape: f32[128,128], index: 3, kind: input, shape index: {}]   ;;  %s3057_s4 = inlined_call_operand.hbm [shape: f32[2,4,128], index: 4, kind: output, shape index: {}]  }
   0x1   :  { %11 = vsyncpa [#allocation6 + $0x1], 0  ;;  %s2144_s15 = smov 0   ;;  %s2146_s16 = smov 0  }
   0x2   :  { %s2148_s17 = smov 0   ;;  %s2150_s18 = smov 0  }
   0x3   :  { %s2152_s19 = smov 0   ;;  %s2154_s20 = smov 0  }
   0x4 LB: > { %s1747_s21 = sadd.s32 4294967295, %s2112_s20   ;;  %s1748_s22 = sadd.s32 4294967294, %s2112_s20   ;;  %s2112_s20 = sphi %s2154_s20, %s17_s20   ;;  %s2108_s19 = sphi %s2152_s19, %s3123_s19   ;;  %s2104_s18 = sphi %s2150_s18, %s3122_s18   ;;  %s2100_s17 = sphi %s2148_s17, %s3121_s17   ;;  %s2096_s16 = sphi %s2146_s16, %s3120_s16   ;;  %s2092_s15 = sphi %s2144_s15, %s3119_s15  }
   0x5   : > { %s29_s23 = sadd.s32 1, %s2108_s19  ;;  %s127_s24 = sadd.s32 1, %s2100_s17 }
   0x6   : > { %p31_p0 = scmp.ge.s32.totalorder %s29_s23, 2  ;;  %p137_p1 = scmp.ne.s32.totalorder %s2100_s17, %s2096_s16 }
   0x7   : > { %p138_p2 = scmp.eq.s32.totalorder %s1747_s21, 1  ;;  %p143_p3 = scmp.ne.s32.totalorder %s2096_s16, %s2092_s15 }
   0x8   : > { %s3125_s23 = smov (%p31_p0, %s29_s23), 0  ;;  %p144_p5 = scmp.eq.s32.totalorder %s1748_s22, 1 }
   0x9   : > { %p2184_p4 = por %p138_p2, %p137_p1  ;;  %s124_s26 = ssub.s32 %s2108_s19, %s3125_s23 }
   0xa   : > { %p1751_p6 = scmp.ge.s32.totalorder %s2112_s20, 1  ;;  %p125_p7 = scmp.eq.s32.totalorder %s124_s26, 0 }
   0xb   : > { %p2191_p8 = por %p144_p5, %p143_p3  ;;  %p184_p9 = scmp.lt.s32.totalorder %s2112_s20, 3 }
   0xc   : > { %s2197_s28 = scalar_select %p125_p7, %s2100_s17, %s127_s24  }
   0xd   : > { %p185_p10 = pnand %p1751_p6, %p184_p9 }
   0xf   : > { %188 = sbr.rel (%p185_p10) target bundleno = 1133 (0x46d), region = 36 }
  0x14   : > { %p215_p11 = scmp.lt.s32.totalorder %s2104_s18, 1  ;;  %v3058_v0 = vmov 0.0   ;;  %vm409_vm0 = vcmask 1043456   ;;  %v278_v3 = vld [vmem:[%s3054_s1] sm:$0xff]  ;;  %vm312_vm1 = vcmask 31744   ;;  %v279_v4 = vld [vmem:[%s3054_s1 + $0x8] sm:$0xff] }
  0x15   : > { %478 = vmatprep.mubr.f32.mxu0 %v3058_v0  ;;  %v280_v5 = vld [vmem:[%s3054_s1 + $0x10] sm:$0xff]  ;;  %v281_v6 = vld [vmem:[%s3054_s1 + $0x18] sm:$0xff]  ;;  %v282_v7 = vld [vmem:[%s3054_s1 + $0x20] sm:$0xff]  ;;  %vm228_vm2 = vcmask 7168   ;;  %v2115_v35 = vmov -inf   ;;  %v2116_v49 = vmov 0  }
  0x16   : > { %s216_s29 = scalar_select %p215_p11, %s2104_s18, 1  ;;  %v283_v8 = vld [vmem:[%s3054_s1 + $0x28] sm:$0xff]  ;;  %v284_v9 = vld [vmem:[%s3054_s1 + $0x30] sm:$0xff]  ;;  %v285_v10 = vld [vmem:[%s3054_s1 + $0x38] sm:$0xff]  ;;  %229 = vst.msk [vmem:[#allocation2] sm:$0xff] %vm228_vm2, %v2115_v35  ;;  %1905 = vset.pattern.permute.xlu0 %v2116_v49  ;;  %1906 = vset.pattern.permute.xlu1 %v2116_v49  ;;  %vm2117_vm3 = vmmov 0  }
  0x17   : > { %v286_v11 = vld [vmem:[%s3054_s1 + $0x40] sm:$0xff]  ;;  %v287_v12 = vld [vmem:[%s3054_s1 + $0x48] sm:$0xff]  ;;  %v288_v13 = vld [vmem:[%s3054_s1 + $0x50] sm:$0xff]  ;;  %230 = vst.msk [vmem:[#allocation2 + $0x8] sm:$0xff] %vm228_vm2, %v2115_v35  ;;  %s211_s10 = sand.u32 1, %s2096_s16   ;;  %s1790_s14 = sshll.u32 %s2104_s18, 6 }
  0x18   : > { %s1793_s30 = sshll.u32 %s216_s29, 3  ;;  %v289_v14 = vld [vmem:[%s3054_s1 + $0x58] sm:$0xff]  ;;  %v290_v15 = vld [vmem:[%s3054_s1 + $0x60] sm:$0xff]  ;;  %v291_v16 = vld [vmem:[%s3054_s1 + $0x68] sm:$0xff]  ;;  %231 = vst.msk [vmem:[#allocation2 + $0x10] sm:$0xff] %vm228_vm2, %v2115_v35  ;;  %s1752_s11 = sshll.u32 %s211_s10, 2 }
  0x19   : > { %s222_s7 = scalar_lea.vmem %s3053_s0, %s1793_s30  ;;  %v292_v17 = vld [vmem:[%s3054_s1 + $0x70] sm:$0xff]  ;;  %v293_v18 = vld [vmem:[%s3054_s1 + $0x78] sm:$0xff]  ;;  %v294_v19 = vld [vmem:[%s3054_s1 + $0x80] sm:$0xff]  ;;  %232 = vst.msk [vmem:[#allocation2 + $0x18] sm:$0xff] %vm228_vm2, %v2115_v35  ;;  %s213_s12 = scalar_lea.vmem [#allocation5], %s1752_s11 }
  0x1a   : > { %v277_v1 = vld [vmem:[%s222_s7] sm:$0xff]  ;;  %v295_v20 = vld [vmem:[%s3054_s1 + $0x88] sm:$0xff]  ;;  %v296_v21 = vld [vmem:[%s3054_s1 + $0x90] sm:$0xff]  ;;  %233 = vst.msk [vmem:[#allocation2 + $0x20] sm:$0xff] %vm228_vm2, %v2115_v35  ;;  %s1674_s13 = sshll.u32 %s213_s12, 4  ;;  %s3009_s24 = scalar_lea.hbm %s3057_s4, %s1790_s14  ;;  %s3004_s13 = int_to_ptr.vmem [resolvable:$true] %s1674_s13 }
  0x1b   : > { %v311_v2 = vcombine.high %v277_v1, %v277_v1  ;;  %v297_v22 = vld [vmem:[%s3054_s1 + $0x98] sm:$0xff]  ;;  %v298_v23 = vld [vmem:[%s3054_s1 + $0xa0] sm:$0xff]  ;;  %v299_v24 = vld [vmem:[%s3054_s1 + $0xa8] sm:$0xff]  ;;  %234 = vst.msk [vmem:[#allocation2 + $0x28] sm:$0xff] %vm228_vm2, %v2115_v35  ;;  %s1661_s26 = scalar_lea.sflag [#allocation6], %s211_s10  ;;  %s2036_s29 = scalar_lea.vmem %s3004_s13, 64 }
  0x1c   : > { %v300_v25 = vld [vmem:[%s3054_s1 + $0xb0] sm:$0xff]  ;;  %v301_v26 = vld [vmem:[%s3054_s1 + $0xb8] sm:$0xff]  ;;  %v302_v27 = vld [vmem:[%s3054_s1 + $0xc0] sm:$0xff]  ;;  %235 = vst.msk [vmem:[#allocation2 + $0x30] sm:$0xff] %vm228_vm2, %v2115_v35  ;;  %p2037_p12 = scmp.ne.s32.totalorder %s3004_s13, %s2036_s29  ;;  %s2118_s18 = smov [#allocation5]  }
  0x1d   : > { %1755 = vmatprep.subr.msk.mxu0 %vm409_vm0, %v311_v2  ;;  %v303_v28 = vld [vmem:[%s3054_s1 + $0xc8] sm:$0xff]  ;;  %v304_v29 = vld [vmem:[%s3054_s1 + $0xd0] sm:$0xff]  ;;  %v305_v30 = vld [vmem:[%s3054_s1 + $0xd8] sm:$0xff]  ;;  %236 = vst.msk [vmem:[#allocation2 + $0x38] sm:$0xff] %vm228_vm2, %v2115_v35  ;;  %s2040_s30 = sshll.u32 %s2118_s18, 4  ;;  %s2041_s30 = int_to_ptr.vmem [resolvable:$false] %s2040_s30 }
  0x1e   : > { %1756 = vmatpush1.msk.msra.mxu0 %vm409_vm0, %v277_v1  ;;  %v306_v31 = vld [vmem:[%s3054_s1 + $0xe0] sm:$0xff]  ;;  %v307_v32 = vld [vmem:[%s3054_s1 + $0xe8] sm:$0xff]  ;;  %v308_v33 = vld [vmem:[%s3054_s1 + $0xf0] sm:$0xff]  ;;  %237 = vst.msk [vmem:[#allocation2 + $0x40] sm:$0xff] %vm228_vm2, %v2115_v35  ;;  %p2038_p13 = pnand %p2037_p12, %p2184_p4  ;;  %s2042_s5 = scalar_lea.vmem %s2041_s30, 128 }
  0x1f   : > { %1757 = vmatmul.mubr.msk.f32.vlgmr.msra.gmra.mxu0 %vm312_vm1, %v278_v3  ;;  %v309_v34 = vld [vmem:[%s3054_s1 + $0xf8] sm:$0xff]  ;;  %238 = vst.msk [vmem:[#allocation2 + $0x48] sm:$0xff] %vm228_vm2, %v2115_v35  ;;  %239 = vst.msk [vmem:[#allocation2 + $0x50] sm:$0xff] %vm228_vm2, %v2115_v35  ;;  %p2043_p1 = scmp.lt.s32.totalorder %s3004_s13, %s2041_s30  ;;  %p2044_p2 = scmp.lt.s32.totalorder %s2042_s5, %s2036_s29 }
  0x20   : > { %484 = vmatprep.mubr.f32.mxu0 %v3058_v0  ;;  %240 = vst.msk [vmem:[#allocation2 + $0x58] sm:$0xff] %vm228_vm2, %v2115_v35  ;;  %241 = vst.msk [vmem:[#allocation2 + $0x60] sm:$0xff] %vm228_vm2, %v2115_v35  ;;  %p2039_p0 = pneg %p2038_p13 }
  0x21   : > { %242 = vst.msk [vmem:[#allocation2 + $0x68] sm:$0xff] %vm228_vm2, %v2115_v35  ;;  %243 = vst.msk [vmem:[#allocation2 + $0x70] sm:$0xff] %vm228_vm2, %v2115_v35  ;;  %p2045_p3 = por %p2044_p2, %p2043_p1 }
  0x22   : > { %244 = vst.msk [vmem:[#allocation2 + $0x78] sm:$0xff] %vm228_vm2, %v2115_v35  ;;  %245 = vst.msk [vmem:[#allocation3] sm:$0xff] %vm228_vm2, %v3058_v0 }
  0x23   : > { %1758 = vmatmul.mubr.msk.f32.gmra.mxu0 %vm312_vm1, %v279_v4  ;;  %246 = vst.msk [vmem:[#allocation3 + $0x8] sm:$0xff] %vm228_vm2, %v3058_v0  ;;  %247 = vst.msk [vmem:[#allocation3 + $0x10] sm:$0xff] %vm228_vm2, %v3058_v0  ;;  %p2046_p5 = pnand %p2045_p3, %p2039_p0 }
  0x24   : > { %490 = vmatprep.mubr.f32.mxu0 %v3058_v0  ;;  %248 = vst.msk [vmem:[#allocation3 + $0x18] sm:$0xff] %vm228_vm2, %v3058_v0  ;;  %249 = vst.msk [vmem:[#allocation3 + $0x20] sm:$0xff] %vm228_vm2, %v3058_v0 }
  0x25   : > { %250 = vst.msk [vmem:[#allocation3 + $0x28] sm:$0xff] %vm228_vm2, %v3058_v0  ;;  %251 = vst.msk [vmem:[#allocation3 + $0x30] sm:$0xff] %vm228_vm2, %v3058_v0 }
  0x26   : > { %252 = vst.msk [vmem:[#allocation3 + $0x38] sm:$0xff] %vm228_vm2, %v3058_v0  ;;  %253 = vst.msk [vmem:[#allocation3 + $0x40] sm:$0xff] %vm228_vm2, %v3058_v0 }
  0x27   : > { %1759 = vmatmul.mubr.msk.f32.gmra.mxu0 %vm312_vm1, %v280_v5  ;;  %254 = vst.msk [vmem:[#allocation3 + $0x48] sm:$0xff] %vm228_vm2, %v3058_v0  ;;  %255 = vst.msk [vmem:[#allocation3 + $0x50] sm:$0xff] %vm228_vm2, %v3058_v0 }
  0x28   : > { %496 = vmatprep.mubr.f32.mxu0 %v3058_v0  ;;  %256 = vst.msk [vmem:[#allocation3 + $0x58] sm:$0xff] %vm228_vm2, %v3058_v0  ;;  %257 = vst.msk [vmem:[#allocation3 + $0x60] sm:$0xff] %vm228_vm2, %v3058_v0 }
  0x29   : > { %258 = vst.msk [vmem:[#allocation3 + $0x68] sm:$0xff] %vm228_vm2, %v3058_v0  ;;  %259 = vst.msk [vmem:[#allocation3 + $0x70] sm:$0xff] %vm228_vm2, %v3058_v0 }
  0x2a   : > { %260 = vst.msk [vmem:[#allocation3 + $0x78] sm:$0xff] %vm228_vm2, %v3058_v0 }
  0x2b   : > { %1760 = vmatmul.mubr.msk.f32.gmra.mxu0 %vm312_vm1, %v281_v6 }
  0x2c   : > { %502 = vmatprep.mubr.f32.mxu0 %v3058_v0 }
  0x2f   : > { %1761 = vmatmul.mubr.msk.f32.gmra.mxu0 %vm312_vm1, %v282_v7 }
  0x30   : > { %508 = vmatprep.mubr.f32.mxu0 %v3058_v0 }
  0x33   : > { %1762 = vmatmul.mubr.msk.f32.gmra.mxu0 %vm312_vm1, %v283_v8 }
  0x34   : > { %514 = vmatprep.mubr.f32.mxu0 %v3058_v0 }
  0x37   : > { %1763 = vmatmul.mubr.msk.f32.gmra.mxu0 %vm312_vm1, %v284_v9 }
  0x38   : > { %520 = vmatprep.mubr.f32.mxu0 %v3058_v0 }
  0x3b   : > { %1764 = vmatmul.mubr.msk.f32.gmra.mxu0 %vm312_vm1, %v285_v10 }
  0x3c   : > { %526 = vmatprep.mubr.f32.mxu0 %v3058_v0 }
  0x3f   : > { %1765 = vmatmul.mubr.msk.f32.gmra.mxu0 %vm312_vm1, %v286_v11 }
  0x40   : > { %532 = vmatprep.mubr.f32.mxu0 %v3058_v0 }
  0x43   : > { %1766 = vmatmul.mubr.msk.f32.gmra.mxu0 %vm312_vm1, %v287_v12 }
  0x44   : > { %538 = vmatprep.mubr.f32.mxu0 %v3058_v0 }
  0x47   : > { %1767 = vmatmul.mubr.msk.f32.gmra.mxu0 %vm312_vm1, %v288_v13 }
  0x48   : > { %544 = vmatprep.mubr.f32.mxu0 %v3058_v0 }
  0x4b   : > { %1768 = vmatmul.mubr.msk.f32.gmra.mxu0 %vm312_vm1, %v289_v14 }
  0x4c   : > { %550 = vmatprep.mubr.f32.mxu0 %v3058_v0 }
  0x4f   : > { %1769 = vmatmul.mubr.msk.f32.gmra.mxu0 %vm312_vm1, %v290_v15 }
  0x50   : > { %556 = vmatprep.mubr.f32.mxu0 %v3058_v0 }
  0x53   : > { %1770 = vmatmul.mubr.msk.f32.gmra.mxu0 %vm312_vm1, %v291_v16 }
  0x54   : > { %562 = vmatprep.mubr.f32.mxu0 %v3058_v0 }
  0x57   : > { %1771 = vmatmul.mubr.msk.f32.gmra.mxu0 %vm312_vm1, %v292_v17 }
  0x58   : > { %568 = vmatprep.mubr.f32.mxu0 %v3058_v0 }
  0x5b   : > { %1772 = vmatmul.mubr.msk.f32.gmra.mxu0 %vm312_vm1, %v293_v18 }
  0x5c   : > { %574 = vmatprep.mubr.f32.mxu0 %v3058_v0 }
  0x5f   : > { %1773 = vmatmul.mubr.msk.f32.gmra.mxu0 %vm312_vm1, %v294_v19 }
  0x60   : > { %580 = vmatprep.mubr.f32.mxu0 %v3058_v0 }
  0x63   : > { %1774 = vmatmul.mubr.msk.f32.gmra.mxu0 %vm312_vm1, %v295_v20 }
  0x64   : > { %586 = vmatprep.mubr.f32.mxu0 %v3058_v0 }
  0x67   : > { %1775 = vmatmul.mubr.msk.f32.gmra.mxu0 %vm312_vm1, %v296_v21 }
  0x68   : > { %592 = vmatprep.mubr.f32.mxu0 %v3058_v0 }
  0x6b   : > { %1776 = vmatmul.mubr.msk.f32.gmra.mxu0 %vm312_vm1, %v297_v22 }
  0x6c   : > { %598 = vmatprep.mubr.f32.mxu0 %v3058_v0 }
  0x6f   : > { %1777 = vmatmul.mubr.msk.f32.gmra.mxu0 %vm312_vm1, %v298_v23 }
  0x70   : > { %604 = vmatprep.mubr.f32.mxu0 %v3058_v0 }
  0x73   : > { %1778 = vmatmul.mubr.msk.f32.gmra.mxu0 %vm312_vm1, %v299_v24 }
  0x74   : > { %610 = vmatprep.mubr.f32.mxu0 %v3058_v0 }
  0x77   : > { %1779 = vmatmul.mubr.msk.f32.gmra.mxu0 %vm312_vm1, %v300_v25 }
  0x78   : > { %616 = vmatprep.mubr.f32.mxu0 %v3058_v0 }
  0x7b   : > { %1780 = vmatmul.mubr.msk.f32.gmra.mxu0 %vm312_vm1, %v301_v26 }
  0x7c   : > { %622 = vmatprep.mubr.f32.mxu0 %v3058_v0 }
  0x7f   : > { %1781 = vmatmul.mubr.msk.f32.gmra.mxu0 %vm312_vm1, %v302_v27 }
  0x80   : > { %628 = vmatprep.mubr.f32.mxu0 %v3058_v0 }
  0x83   : > { %1782 = vmatmul.mubr.msk.f32.gmra.mxu0 %vm312_vm1, %v303_v28 }
  0x84   : > { %634 = vmatprep.mubr.f32.mxu0 %v3058_v0 }
  0x87   : > { %1783 = vmatmul.mubr.msk.f32.gmra.mxu0 %vm312_vm1, %v304_v29 }
  0x88   : > { %640 = vmatprep.mubr.f32.mxu0 %v3058_v0 }
  0x8b   : > { %1784 = vmatmul.mubr.msk.f32.gmra.mxu0 %vm312_vm1, %v305_v30 }
  0x8c   : > { %646 = vmatprep.mubr.f32.mxu0 %v3058_v0 }
  0x8f   : > { %1785 = vmatmul.mubr.msk.f32.gmra.mxu0 %vm312_vm1, %v306_v31 }
  0x90   : > { %652 = vmatprep.mubr.f32.mxu0 %v3058_v0 }
  0x93   : > { %1786 = vmatmul.mubr.msk.f32.gmra.mxu0 %vm312_vm1, %v307_v32 }
  0x94   : > { %658 = vmatprep.mubr.f32.mxu0 %v3058_v0 }
  0x97   : > { %1787 = vmatmul.mubr.msk.f32.gmra.mxu0 %vm312_vm1, %v308_v33 }
  0x98   : > { %664 = vmatprep.mubr.f32.mxu0 %v3058_v0 }
  0x9b   : > { %1788 = vmatmul.mubr.msk.f32.gmra.mxu0 %vm312_vm1, %v309_v34 }
  0xdf   : > { %v2412_v36 = vpop.f32.mrf.mxu0 }
  0xe1   : > { %v2414_v37 = vpop.f32.mrf.mxu0 }
  0xe2   : > { %v687_v38 = vmax.f32 %v2412_v36, %v2414_v37 }
  0xe3   : > { %v2418_v39 = vpop.f32.mrf.mxu0 }
  0xe4   : > { %688 = vmax.xlane.f32.xlu0 %v687_v38 }
  0xe5   : > { %v2420_v40 = vpop.f32.mrf.mxu0 }
  0xe6   : > { %v690_v41 = vmax.f32 %v2418_v39, %v2420_v40 }
  0xe7   : > { %v2424_v42 = vpop.f32.mrf.mxu0 }
  0xe8   : > { %691 = vmax.xlane.f32.xlu0 %v690_v41 }
  0xe9   : > { %v2426_v43 = vpop.f32.mrf.mxu0 }
  0xea   : > { %v693_v44 = vmax.f32 %v2424_v42, %v2426_v43 }
  0xeb   : > { %v2430_v45 = vpop.f32.mrf.mxu0 }
  0xec   : > { %694 = vmax.xlane.f32.xlu1 %v693_v44 }
  0xed   : > { %v2432_v46 = vpop.f32.mrf.mxu0 }
  0xee   : > { %v696_v47 = vmax.f32 %v2430_v45, %v2432_v46 }
  0xef   : > { %v2436_v48 = vpop.f32.mrf.mxu0 }
  0xf0   : > { %697 = vmax.xlane.f32.xlu1 %v696_v47 }
  0xf1   : > { %v2438_v50 = vpop.f32.mrf.mxu0 }
  0xf2   : > { %v699_v51 = vmax.f32 %v2436_v48, %v2438_v50 }
  0xf3   : > { %v2442_v52 = vpop.f32.mrf.mxu0 }
  0xf4   : > { %700 = vmax.xlane.f32.xlu0 %v699_v51 }
  0xf5   : > { %v2444_v53 = vpop.f32.mrf.mxu0 }
  0xf6   : > { %v702_v54 = vmax.f32 %v2442_v52, %v2444_v53 }
  0xf7   : > { %v2448_v55 = vpop.f32.mrf.mxu0 }
  0xf8   : > { %703 = vmax.xlane.f32.xlu1 %v702_v54 }
  0xf9   : > { %v2450_v56 = vpop.f32.mrf.mxu0 }
  0xfa   : > { %v705_v57 = vmax.f32 %v2448_v55, %v2450_v56 }
  0xfb   : > { %v2454_v58 = vpop.f32.mrf.mxu0 }
  0xfc   : > { %706 = vmax.xlane.f32.xlu0 %v705_v57 }
  0xfd   : > { %v2456_v59 = vpop.f32.mrf.mxu0 }
  0xfe   : > { %v708_v60 = vmax.f32 %v2454_v58, %v2456_v59 }
  0xff   : > { %v2460_v61 = vpop.f32.mrf.mxu0 }
 0x100   : > { %709 = vmax.xlane.f32.xlu1 %v708_v60 }
 0x101   : > { %v2462_v62 = vpop.f32.mrf.mxu0 }
 0x102   : > { %v711_v63 = vmax.f32 %v2460_v61, %v2462_v62 }
 0x103   : > { %v2466_v1 = vpop.f32.mrf.mxu0 }
 0x104   : > { %712 = vmax.xlane.f32.xlu0 %v711_v63 }
 0x105   : > { %v2468_v2 = vpop.f32.mrf.mxu0 }
 0x106   : > { %v714_v3 = vmax.f32 %v2466_v1, %v2468_v2 }
 0x107   : > { %v2472_v4 = vpop.f32.mrf.mxu0 }
 0x108   : > { %715 = vmax.xlane.f32.xlu1 %v714_v3 }
 0x109   : > { %v2474_v5 = vpop.f32.mrf.mxu0 }
 0x10a   : > { %v717_v6 = vmax.f32 %v2472_v4, %v2474_v5 }
 0x10b   : > { %v2478_v7 = vpop.f32.mrf.mxu0 }
 0x10c   : > { %718 = vmax.xlane.f32.xlu0 %v717_v6 }
 0x10d   : > { %v2480_v8 = vpop.f32.mrf.mxu0 }
 0x10e   : > { %v720_v9 = vmax.f32 %v2478_v7, %v2480_v8 }
 0x10f   : > { %v2484_v10 = vpop.f32.mrf.mxu0 }
 0x110   : > { %721 = vmax.xlane.f32.xlu1 %v720_v9 }
 0x111   : > { %v2486_v11 = vpop.f32.mrf.mxu0 }
 0x112   : > { %v723_v12 = vmax.f32 %v2484_v10, %v2486_v11 }
 0x113   : > { %v2490_v13 = vpop.f32.mrf.mxu0 }
 0x114   : > { %724 = vmax.xlane.f32.xlu0 %v723_v12 }
 0x115   : > { %v2492_v14 = vpop.f32.mrf.mxu0 }
 0x116   : > { %v726_v15 = vmax.f32 %v2490_v13, %v2492_v14 }
 0x117   : > { %v2496_v16 = vpop.f32.mrf.mxu0 }
 0x118   : > { %3075 = vst [vmem:[#allocation8_spill] sm:$0xff] %v2496_v16  ;;  %727 = vmax.xlane.f32.xlu1 %v726_v15 }
 0x119   : > { %v2498_v17 = vpop.f32.mrf.mxu0 }
 0x11a   : > { %3076 = vst [vmem:[#allocation9_spill] sm:$0xff] %v2498_v17  ;;  %v729_v18 = vmax.f32 %v2496_v16, %v2498_v17  ;;  %v2541_v16 = vld [vmem:[#allocation2 + $0x8] sm:$0xff] }
 0x11b   : > { %v2502_v19 = vpop.f32.mrf.mxu0  ;;  %3081 = vst [vmem:[#allocation14_spill] sm:$0xff] %v2541_v16 }
 0x11c   : > { %3077 = vst [vmem:[#allocation10_spill] sm:$0xff] %v2502_v19  ;;  %730 = vmax.xlane.f32.xlu0 %v729_v18 }
 0x11d   : > { %v2504_v20 = vpop.f32.mrf.mxu0 }
 0x11e   : > { %3078 = vst [vmem:[#allocation11_spill] sm:$0xff] %v2504_v20  ;;  %v732_v21 = vmax.f32 %v2502_v19, %v2504_v20  ;;  %v2536_v20 = vld [vmem:[#allocation2] sm:$0xff] }
 0x11f   : > { %v2508_v22 = vpop.f32.mrf.mxu0  ;;  %3079 = vst [vmem:[#allocation12_spill] sm:$0xff] %v2536_v20 }
 0x120   : > { %733 = vmax.xlane.f32.xlu1 %v732_v21 }
 0x121   : > { %v2510_v23 = vpop.f32.mrf.mxu0 }
 0x123   : > { %v2512_v24 = vpop.f32.mrf.mxu0 }
 0x125   : > { %v2514_v25 = vpop.f32.mrf.mxu0 }
 0x127   : > { %v2516_v26 = vpop.f32.mrf.mxu0 }
 0x129   : > { %v2518_v27 = vpop.f32.mrf.mxu0 }
 0x12b   : > { %v2520_v28 = vpop.f32.mrf.mxu0 }
 0x12d   : > { %v2522_v29 = vpop.f32.mrf.mxu0 }
 0x12f   : > { %v2524_v30 = vpop.f32.mrf.mxu0 }
 0x131   : > { %v2526_v31 = vpop.f32.mrf.mxu0 }
 0x133   : > { %v2528_v32 = vpop.f32.mrf.mxu0 }
 0x135   : > { %v2530_v33 = vpop.f32.mrf.mxu0 }
 0x137   : > { %v2532_v34 = vpop.f32.mrf.mxu0 }
 0x139   : > { %v2534_v35 = vpop.f32.mrf.mxu0 }
 0x13b   : > { %v618_v38 = vpop.f32.mrf.mxu0 }
 0x13d   : > { %v620_v41 = vpop.f32.mrf.mxu0 }
 0x13f   : > { %v624_v44 = vpop.f32.mrf.mxu0 }
 0x141   : > { %v626_v47 = vpop.f32.mrf.mxu0 }
 0x143   : > { %v630_v49 = vpop.f32.mrf.mxu0 }
 0x145   : > { %v632_v51 = vpop.f32.mrf.mxu0 }
 0x147   : > { %v636_v54 = vpop.f32.mrf.mxu0 }
 0x149   : > { %v638_v57 = vpop.f32.mrf.mxu0 }
 0x14b   : > { %v642_v60 = vpop.f32.mrf.mxu0 }
 0x14d   : > { %v644_v63 = vpop.f32.mrf.mxu0 }
 0x14f   : > { %v648_v3 = vpop.f32.mrf.mxu0 }
 0x151   : > { %v650_v6 = vpop.f32.mrf.mxu0 }
 0x153   : > { %v654_v9 = vpop.f32.mrf.mxu0 }
 0x155   : > { %v656_v12 = vpop.f32.mrf.mxu0 }
 0x157   : > { %v660_v15 = vpop.f32.mrf.mxu0 }
 0x159   : > { %v662_v18 = vpop.f32.mrf.mxu0 }
 0x15b   : > { %v666_v21 = vpop.f32.mrf.mxu0 }
 0x15d   : > { %v668_v0 = vpop.f32.mrf.mxu0 }
 0x15e   : > { %1200 = vmatprep.subr.mxu1 %v668_v0 }
 0x15f   : > { %1201 = vmatpush1.xpose.msra.mxu1 %v666_v21 }
 0x160   : > { %1202 = vmatprep.subr.mxu1 %v662_v18 }
 0x163   : > { %1203 = vmatpush1.xpose.msra.mxu1 %v660_v15 }
 0x164   : > { %1204 = vmatprep.subr.mxu1 %v656_v12 }
 0x167   : > { %1205 = vmatpush1.xpose.msra.mxu1 %v654_v9 }
 0x168   : > { %1206 = vmatprep.subr.mxu1 %v650_v6 }
 0x16b   : > { %1207 = vmatpush1.xpose.msra.mxu1 %v648_v3 }
 0x16c   : > { %1208 = vmatprep.subr.mxu1 %v644_v63  ;;  %v2551_v63 = vld [vmem:[#allocation2 + $0x10] sm:$0xff] }
 0x16d   : > { %v689_v19 = vpop.xlane.xlu0 %688  ;;  %3083 = vst [vmem:[#allocation16_spill] sm:$0xff] %v2551_v63 }
 0x16e   : > { %v2539_v17 = vmax.f32 %v2536_v20, %v689_v19 }
 0x16f   : > { %1209 = vmatpush1.xpose.msra.mxu1 %v642_v60 }
 0x170   : > { %3080 = vst [vmem:[#allocation13_spill] sm:$0xff] %v2539_v17  ;;  %1377 = vst.msk [vmem:[#allocation2] sm:$0xff] %vm228_vm2, %v2539_v17  ;;  %801 = vperm.xlu0 %1905, %v2539_v17   ;;  %1210 = vmatprep.subr.mxu1 %v638_v57  ;;  %v2561_v57 = vld [vmem:[#allocation2 + $0x18] sm:$0xff] }
 0x171   : > { %v692_v6 = vpop.xlane.xlu0 %691  ;;  %3085 = vst [vmem:[#allocation18_spill] sm:$0xff] %v2561_v57 }
 0x172   : > { %v2549_v3 = vmax.f32 %v2541_v16, %v692_v6  ;;  %v3088_v6 = vmov 0.0  }
 0x173   : > { %1211 = vmatpush1.xpose.msra.mxu1 %v636_v54 }
 0x174   : > { %3082 = vst [vmem:[#allocation15_spill] sm:$0xff] %v2549_v3  ;;  %1378 = vst.msk [vmem:[#allocation2 + $0x8] sm:$0xff] %vm228_vm2, %v2549_v3  ;;  %806 = vperm.xlu1 %1906, %v2549_v3   ;;  %1212 = vmatprep.subr.mxu1 %v632_v51  ;;  %v2571_v51 = vld [vmem:[#allocation2 + $0x20] sm:$0xff] }
 0x175   : > { %v695_v60 = vpop.xlane.xlu1 %694 }
 0x176   : > { %v2559_v9 = vmax.f32 %v2551_v63, %v695_v60  ;;  %v2592_v60 = vld [vmem:[#allocation2 + $0x30] sm:$0xff] }
 0x177   : > { %1213 = vmatpush1.xpose.msra.mxu1 %v630_v49 }
 0x178   : > { %3084 = vst [vmem:[#allocation17_spill] sm:$0xff] %v2559_v9  ;;  %1379 = vst.msk [vmem:[#allocation2 + $0x10] sm:$0xff] %vm228_vm2, %v2559_v9  ;;  %811 = vperm.xlu1 %1906, %v2559_v9   ;;  %1214 = vmatprep.subr.mxu1 %v626_v47  ;;  %v2581_v47 = vld [vmem:[#allocation2 + $0x28] sm:$0xff] }
 0x179   : > { %v698_v54 = vpop.xlane.xlu1 %697 }
 0x17a   : > { %v2569_v15 = vmax.f32 %v2561_v57, %v698_v54 }
 0x17b   : > { %1215 = vmatpush1.xpose.msra.mxu1 %v624_v44 }
 0x17c   : > { %3086 = vst [vmem:[#allocation19_spill] sm:$0xff] %v2569_v15  ;;  %1380 = vst.msk [vmem:[#allocation2 + $0x18] sm:$0xff] %vm228_vm2, %v2569_v15  ;;  %816 = vperm.xlu1 %1906, %v2569_v15   ;;  %1216 = vmatprep.subr.mxu1 %v620_v41 }
 0x17d   : > { %v701_v49 = vpop.xlane.xlu0 %700 }
 0x17e   : > { %v2579_v21 = vmax.f32 %v2571_v51, %v701_v49  ;;  %v2604_v49 = vld [vmem:[#allocation2 + $0x38] sm:$0xff] }
 0x17f   : > { %1217 = vmatpush1.xpose.msra.mxu1 %v618_v38 }
 0x180   : > { %3087 = vst [vmem:[#allocation20_spill] sm:$0xff] %v2579_v21  ;;  %1381 = vst.msk [vmem:[#allocation2 + $0x20] sm:$0xff] %vm228_vm2, %v2579_v21  ;;  %821 = vperm.xlu1 %1906, %v2579_v21   ;;  %1218 = vmatprep.subr.mxu1 %v2534_v35 }
 0x181   : > { %v704_v44 = vpop.xlane.xlu1 %703 }
 0x182   : > { %v2590_v41 = vmax.f32 %v2581_v47, %v704_v44 }
 0x183   : > { %1219 = vmatpush1.xpose.msra.mxu1 %v2532_v34 }
 0x184   : > { %1382 = vst.msk [vmem:[#allocation2 + $0x28] sm:$0xff] %vm228_vm2, %v2590_v41  ;;  %826 = vperm.xlu1 %1906, %v2590_v41   ;;  %1220 = vmatprep.subr.mxu1 %v2530_v33 }
 0x185   : > { %v707_v54 = vpop.xlane.xlu0 %706 }
 0x186   : > { %v2602_v35 = vmax.f32 %v2592_v60, %v707_v54  ;;  %v2616_v54 = vld [vmem:[#allocation2 + $0x40] sm:$0xff] }
 0x187   : > { %1221 = vmatpush1.xpose.msra.mxu1 %v2528_v32 }
 0x188   : > { %1383 = vst.msk [vmem:[#allocation2 + $0x30] sm:$0xff] %vm228_vm2, %v2602_v35  ;;  %831 = vperm.xlu1 %1906, %v2602_v35   ;;  %1222 = vmatprep.subr.mxu1 %v2526_v31 }
 0x189   : > { %v710_v44 = vpop.xlane.xlu1 %709 }
 0x18a   : > { %v2614_v33 = vmax.f32 %v2604_v49, %v710_v44  ;;  %v2628_v44 = vld [vmem:[#allocation2 + $0x48] sm:$0xff] }
 0x18b   : > { %1223 = vmatpush1.xpose.msra.mxu1 %v2524_v30  ;;  %v2686_v30 = vld [vmem:[#allocation2 + $0x70] sm:$0xff] }
 0x18c   : > { %1384 = vst.msk [vmem:[#allocation2 + $0x38] sm:$0xff] %vm228_vm2, %v2614_v33  ;;  %836 = vperm.xlu1 %1906, %v2614_v33   ;;  %1224 = vmatprep.subr.mxu1 %v2522_v29 }
 0x18d   : > { %v713_v0 = vpop.xlane.xlu0 %712 }
 0x18e   : > { %v2626_v31 = vmax.f32 %v2616_v54, %v713_v0  ;;  %v2640_v0 = vld [vmem:[#allocation2 + $0x50] sm:$0xff] }
 0x18f   : > { %1225 = vmatpush1.xpose.msra.mxu1 %v2520_v28 }
 0x190   : > { %1385 = vst.msk [vmem:[#allocation2 + $0x40] sm:$0xff] %vm228_vm2, %v2626_v31  ;;  %841 = vperm.xlu1 %1906, %v2626_v31   ;;  %1226 = vmatprep.subr.mxu1 %v2518_v27 }
 0x191   : > { %v716_v19 = vpop.xlane.xlu1 %715 }
 0x192   : > { %v2638_v29 = vmax.f32 %v2628_v44, %v716_v19  ;;  %v2652_v19 = vld [vmem:[#allocation2 + $0x58] sm:$0xff] }
 0x193   : > { %1227 = vmatpush1.xpose.msra.mxu1 %v2516_v26 }
 0x194   : > { %1386 = vst.msk [vmem:[#allocation2 + $0x48] sm:$0xff] %vm228_vm2, %v2638_v29  ;;  %846 = vperm.xlu0 %1905, %v2638_v29   ;;  %1228 = vmatprep.subr.mxu1 %v2514_v25 }
 0x195   : > { %v719_v12 = vpop.xlane.xlu0 %718 }
 0x196   : > { %v2650_v27 = vmax.f32 %v2640_v0, %v719_v12  ;;  %v2664_v12 = vld [vmem:[#allocation2 + $0x60] sm:$0xff] }
 0x197   : > { %1229 = vmatpush1.xpose.msra.mxu1 %v2512_v24  ;;  %v2696_v24 = vld [vmem:[#allocation2 + $0x78] sm:$0xff] }
 0x198   : > { %1387 = vst.msk [vmem:[#allocation2 + $0x50] sm:$0xff] %vm228_vm2, %v2650_v27  ;;  %851 = vperm.xlu1 %1906, %v2650_v27   ;;  %1230 = vmatprep.subr.mxu1 %v2510_v23 }
 0x199   : > { %v722_v18 = vpop.xlane.xlu1 %721 }
 0x19a   : > { %v2662_v25 = vmax.f32 %v2652_v19, %v722_v18  ;;  %v2676_v18 = vld [vmem:[#allocation2 + $0x68] sm:$0xff] }
 0x19b   : > { %1231 = vmatpush1.xpose.msra.mxu1 %v2508_v22 }
 0x19c   : > { %1388 = vst.msk [vmem:[#allocation2 + $0x58] sm:$0xff] %vm228_vm2, %v2662_v25  ;;  %856 = vperm.xlu0 %1905, %v2662_v25   ;;  %1811 = vmatprep.subr.mxu1 %v3088_v6 }
 0x19d   : > { %v725_v38 = vpop.xlane.xlu0 %724 }
 0x19e   : > { %v2674_v23 = vmax.f32 %v2664_v12, %v725_v38 }
 0x1a0   : > { %1389 = vst.msk [vmem:[#allocation2 + $0x60] sm:$0xff] %vm228_vm2, %v2674_v23  ;;  %861 = vperm.xlu1 %1906, %v2674_v23  }
 0x1a1   : > { %v728_v22 = vpop.xlane.xlu1 %727 }
 0x1a2   : > { %v2684_v32 = vmax.f32 %v2676_v18, %v728_v22 }
 0x1a4   : > { %1390 = vst.msk [vmem:[#allocation2 + $0x68] sm:$0xff] %vm228_vm2, %v2684_v32  ;;  %866 = vperm.xlu0 %1905, %v2684_v32  }
 0x1a5   : > { %v731_v28 = vpop.xlane.xlu0 %730 }
 0x1a6   : > { %v2694_v26 = vmax.f32 %v2686_v30, %v731_v28 }
 0x1a8   : > { %1391 = vst.msk [vmem:[#allocation2 + $0x70] sm:$0xff] %vm228_vm2, %v2694_v26  ;;  %871 = vperm.xlu1 %1906, %v2694_v26  }
 0x1a9   : > { %v734_v34 = vpop.xlane.xlu1 %733 }
 0x1aa   : > { %v2704_v38 = vmax.f32 %v2696_v24, %v734_v34 }
 0x1ac   : > { %1392 = vst.msk [vmem:[#allocation2 + $0x78] sm:$0xff] %vm228_vm2, %v2704_v38  ;;  %876 = vperm.xlu0 %1905, %v2704_v38  }
 0x1eb   : > { %v802_v28 = vpop.permute.xlu0 %801 }
 0x1ec   : > { %v879_v22 = vsub.f32 %v2412_v36, %v802_v28  ;;  %v880_v17 = vsub.f32 %v2414_v37, %v802_v28 }
 0x1ee   : > { %v911_v20 = vmul.f32 1.442695, %v879_v22  ;;  %v913_v3 = vmul.f32 1.442695, %v880_v17 }
 0x1ef   : > { %v807_v16 = vpop.permute.xlu1 %806 }
 0x1f0   : > { %1908 = vpow2.f32 %v911_v20  ;;  %v881_v34 = vsub.f32 %v2418_v39, %v807_v16  ;;  %v882_v9 = vsub.f32 %v2420_v40, %v807_v16 }
 0x1f1   : > { %1910 = vpow2.f32 %v913_v3 }
 0x1f2   : > { %v915_v6 = vmul.f32 1.442695, %v881_v34  ;;  %v917_v63 = vmul.f32 1.442695, %v882_v9 }
 0x1f3   : > { %v812_v15 = vpop.permute.xlu1 %811 }
 0x1f4   : > { %1912 = vpow2.f32 %v915_v6  ;;  %v883_v57 = vsub.f32 %v2424_v42, %v812_v15  ;;  %v884_v21 = vsub.f32 %v2426_v43, %v812_v15 }
 0x1f5   : > { %1914 = vpow2.f32 %v917_v63 }
 0x1f6   : > { %v919_v36 = vmul.f32 1.442695, %v883_v57  ;;  %v921_v37 = vmul.f32 1.442695, %v884_v21 }
 0x1f7   : > { %v817_v22 = vpop.permute.xlu1 %816 }
 0x1f8   : > { %1916 = vpow2.f32 %v919_v36  ;;  %v885_v17 = vsub.f32 %v2430_v45, %v817_v22  ;;  %v886_v39 = vsub.f32 %v2432_v46, %v817_v22 }
 0x1f9   : > { %1918 = vpow2.f32 %v921_v37 }
 0x1fa   : > { %v923_v40 = vmul.f32 1.442695, %v885_v17  ;;  %v925_v16 = vmul.f32 1.442695, %v886_v39 }
 0x1fb   : > { %v822_v20 = vpop.permute.xlu1 %821 }
 0x1fc   : > { %1920 = vpow2.f32 %v923_v40  ;;  %v887_v3 = vsub.f32 %v2436_v48, %v822_v20  ;;  %v888_v42 = vsub.f32 %v2438_v50, %v822_v20 }
 0x1fd   : > { %v1909_v9 = vpop.eup %1908  ;;  %1922 = vpow2.f32 %v925_v16 }
 0x1fe   : > { %v1911_v43 = vpop.eup %1910  ;;  %v927_v63 = vmul.f32 1.442695, %v887_v3  ;;  %v929_v57 = vmul.f32 1.442695, %v888_v42 }
 0x1ff   : > { %1264 = vmatprep.mubr.f32.mxu1 %v1911_v43  ;;  %v827_v15 = vpop.permute.xlu1 %826  ;;  %v2721_v21 = vadd.f32 %v1911_v43, %v1909_v9 }
 0x200   : > { %1924 = vpow2.f32 %v927_v63  ;;  %v889_v45 = vsub.f32 %v2442_v52, %v827_v15  ;;  %v890_v46 = vsub.f32 %v2444_v53, %v827_v15  ;;  %1265 = vmatmul.mubr.f32.vlgmr.msra.gmra.mxu1 %v1909_v9 }
 0x201   : > { %v1913_v6 = vpop.eup %1912  ;;  %1926 = vpow2.f32 %v929_v57 }
 0x202   : > { %v1915_v48 = vpop.eup %1914  ;;  %v931_v28 = vmul.f32 1.442695, %v889_v45  ;;  %v933_v50 = vmul.f32 1.442695, %v890_v46 }
 0x203   : > { %1269 = vmatprep.mubr.f32.mxu1 %v1915_v48  ;;  %v832_v34 = vpop.permute.xlu1 %831  ;;  %v2725_v36 = vadd.f32 %v1915_v48, %v1913_v6 }
 0x204   : > { %1928 = vpow2.f32 %v931_v28  ;;  %v891_v37 = vsub.f32 %v2448_v55, %v832_v34  ;;  %v892_v22 = vsub.f32 %v2450_v56, %v832_v34  ;;  %1270 = vmatmul.mubr.f32.gmra.mxu1 %v1913_v6 }
 0x205   : > { %v1917_v17 = vpop.eup %1916  ;;  %1930 = vpow2.f32 %v933_v50 }
 0x206   : > { %v1919_v52 = vpop.eup %1918  ;;  %v935_v53 = vmul.f32 1.442695, %v891_v37  ;;  %v937_v39 = vmul.f32 1.442695, %v892_v22 }
 0x207   : > { %1274 = vmatprep.mubr.f32.mxu1 %v1919_v52  ;;  %v837_v40 = vpop.permute.xlu1 %836  ;;  %v2729_v16 = vadd.f32 %v1919_v52, %v1917_v17 }
 0x208   : > { %1932 = vpow2.f32 %v935_v53  ;;  %v893_v20 = vsub.f32 %v2454_v58, %v837_v40  ;;  %v894_v3 = vsub.f32 %v2456_v59, %v837_v40  ;;  %1275 = vmatmul.mubr.f32.gmra.mxu1 %v1917_v17 }
 0x209   : > { %v1921_v42 = vpop.eup %1920  ;;  %1934 = vpow2.f32 %v937_v39 }
 0x20a   : > { %v1923_v55 = vpop.eup %1922  ;;  %v939_v56 = vmul.f32 1.442695, %v893_v20  ;;  %v941_v9 = vmul.f32 1.442695, %v894_v3 }
 0x20b   : > { %1279 = vmatprep.mubr.f32.mxu1 %v1923_v55  ;;  %v842_v43 = vpop.permute.xlu1 %841  ;;  %v2733_v63 = vadd.f32 %v1923_v55, %v1921_v42 }
 0x20c   : > { %1936 = vpow2.f32 %v939_v56  ;;  %v895_v57 = vsub.f32 %v2460_v61, %v842_v43  ;;  %v896_v15 = vsub.f32 %v2462_v62, %v842_v43  ;;  %1280 = vmatmul.mubr.f32.gmra.mxu1 %v1921_v42 }
 0x20d   : > { %v1925_v45 = vpop.eup %1924  ;;  %1938 = vpow2.f32 %v941_v9 }
 0x20e   : > { %v1927_v58 = vpop.eup %1926  ;;  %v943_v59 = vmul.f32 1.442695, %v895_v57  ;;  %v945_v46 = vmul.f32 1.442695, %v896_v15 }
 0x20f   : > { %1284 = vmatprep.mubr.f32.mxu1 %v1927_v58  ;;  %v847_v6 = vpop.permute.xlu0 %846  ;;  %v2737_v48 = vadd.f32 %v1927_v58, %v1925_v45 }
 0x210   : > { %1940 = vpow2.f32 %v943_v59  ;;  %v897_v28 = vsub.f32 %v2466_v1, %v847_v6  ;;  %v898_v50 = vsub.f32 %v2468_v2, %v847_v6  ;;  %1285 = vmatmul.mubr.f32.gmra.mxu1 %v1925_v45 }
 0x211   : > { %v1929_v34 = vpop.eup %1928  ;;  %1942 = vpow2.f32 %v945_v46 }
 0x212   : > { %v1931_v61 = vpop.eup %1930  ;;  %v947_v62 = vmul.f32 1.442695, %v897_v28  ;;  %v949_v37 = vmul.f32 1.442695, %v898_v50 }
 0x213   : > { %1289 = vmatprep.mubr.f32.mxu1 %v1931_v61  ;;  %v852_v22 = vpop.permute.xlu1 %851  ;;  %v2741_v17 = vadd.f32 %v1931_v61, %v1929_v34  ;;  %v3089_v61 = vld [vmem:[#allocation8_spill] sm:$0xff] }
 0x214   : > { %1944 = vpow2.f32 %v947_v62  ;;  %v899_v52 = vsub.f32 %v2472_v4, %v852_v22  ;;  %v900_v53 = vsub.f32 %v2474_v5, %v852_v22  ;;  %1290 = vmatmul.mubr.f32.gmra.mxu1 %v1929_v34 }
 0x215   : > { %v1933_v39 = vpop.eup %1932  ;;  %1946 = vpow2.f32 %v949_v37  ;;  %v3090_v37 = vld [vmem:[#allocation9_spill] sm:$0xff] }
 0x216   : > { %v1935_v1 = vpop.eup %1934  ;;  %v951_v2 = vmul.f32 1.442695, %v899_v52  ;;  %v953_v40 = vmul.f32 1.442695, %v900_v53 }
 0x217   : > { %1294 = vmatprep.mubr.f32.mxu1 %v1935_v1  ;;  %v857_v20 = vpop.permute.xlu0 %856  ;;  %v2745_v3 = vadd.f32 %v1935_v1, %v1933_v39  ;;  %v3091_v1 = vld [vmem:[#allocation10_spill] sm:$0xff] }
 0x218   : > { %1948 = vpow2.f32 %v951_v2  ;;  %v901_v42 = vsub.f32 %v2478_v7, %v857_v20  ;;  %v902_v55 = vsub.f32 %v2480_v8, %v857_v20  ;;  %1295 = vmatmul.mubr.f32.gmra.mxu1 %v1933_v39 }
 0x219   : > { %v2749_v56 = vpop.eup %1936  ;;  %1950 = vpow2.f32 %v953_v40  ;;  %v3092_v40 = vld [vmem:[#allocation11_spill] sm:$0xff] }
 0x21a   : > { %v2751_v4 = vpop.eup %1938  ;;  %v955_v5 = vmul.f32 1.442695, %v901_v42  ;;  %v957_v9 = vmul.f32 1.442695, %v902_v55 }
 0x21b   : > { %1299 = vmatprep.mubr.f32.mxu1 %v2751_v4  ;;  %v862_v43 = vpop.permute.xlu1 %861 }
 0x21c   : > { %1952 = vpow2.f32 %v955_v5  ;;  %v903_v57 = vsub.f32 %v2484_v10, %v862_v43  ;;  %v904_v15 = vsub.f32 %v2486_v11, %v862_v43  ;;  %1300 = vmatmul.mubr.f32.gmra.mxu1 %v2749_v56 }
 0x21d   : > { %v2757_v7 = vpop.eup %1940  ;;  %1954 = vpow2.f32 %v957_v9 }
 0x21e   : > { %v2759_v8 = vpop.eup %1942  ;;  %v959_v45 = vmul.f32 1.442695, %v903_v57  ;;  %v961_v58 = vmul.f32 1.442695, %v904_v15 }
 0x21f   : > { %1304 = vmatprep.mubr.f32.mxu1 %v2759_v8  ;;  %v867_v59 = vpop.permute.xlu0 %866 }
 0x220   : > { %1956 = vpow2.f32 %v959_v45  ;;  %v905_v46 = vsub.f32 %v2490_v13, %v867_v59  ;;  %v906_v6 = vsub.f32 %v2492_v14, %v867_v59  ;;  %1305 = vmatmul.mubr.f32.gmra.mxu1 %v2757_v7 }
 0x221   : > { %v1945_v10 = vpop.eup %1944  ;;  %1958 = vpow2.f32 %v961_v58 }
 0x222   : > { %v1947_v11 = vpop.eup %1946  ;;  %v963_v28 = vmul.f32 1.442695, %v905_v46  ;;  %v965_v50 = vmul.f32 1.442695, %v906_v6 }
 0x223   : > { %1309 = vmatprep.mubr.f32.mxu1 %v1947_v11  ;;  %v872_v34 = vpop.permute.xlu1 %871 }
 0x224   : > { %1960 = vpow2.f32 %v963_v28  ;;  %v907_v62 = vsub.f32 %v3089_v61, %v872_v34  ;;  %v908_v22 = vsub.f32 %v3090_v37, %v872_v34  ;;  %1310 = vmatmul.mubr.f32.gmra.mxu1 %v1945_v10 }
 0x225   : > { %v1949_v52 = vpop.eup %1948  ;;  %1962 = vpow2.f32 %v965_v50 }
 0x226   : > { %v1951_v13 = vpop.eup %1950  ;;  %v967_v53 = vmul.f32 1.442695, %v907_v62  ;;  %v969_v14 = vmul.f32 1.442695, %v908_v22  ;;  %v1034_v22 = vadd.f32 %v1947_v11, %v1945_v10 }
 0x227   : > { %1314 = vmatprep.mubr.f32.mxu1 %v1951_v13  ;;  %v877_v39 = vpop.permute.xlu0 %876  ;;  %v1037_v37 = vadd.f32 %v1951_v13, %v1949_v52  ;;  %v3107_v13 = vld [vmem:[#allocation19_spill] sm:$0xff] }
 0x228   : > { %1964 = vpow2.f32 %v967_v53  ;;  %v909_v2 = vsub.f32 %v3091_v1, %v877_v39  ;;  %v910_v20 = vsub.f32 %v3092_v40, %v877_v39  ;;  %1315 = vmatmul.mubr.f32.gmra.mxu1 %v1949_v52  ;;  %v1031_v53 = vadd.f32 %v2759_v8, %v2757_v7 }
 0x229   : > { %v1953_v42 = vpop.eup %1952  ;;  %1966 = vpow2.f32 %v969_v14  ;;  %v1028_v14 = vadd.f32 %v2751_v4, %v2749_v56  ;;  %v3093_v7 = vsub.f32 %v2686_v30, %v2694_v26  ;;  %v3094_v56 = vsub.f32 %v2696_v24, %v2704_v38 }
 0x22a   : > { %v1955_v55 = vpop.eup %1954  ;;  %v971_v5 = vmul.f32 1.442695, %v909_v2  ;;  %v973_v9 = vmul.f32 1.442695, %v910_v20  ;;  %v3097_v30 = vsub.f32 %v2652_v19, %v2662_v25  ;;  %v3098_v38 = vsub.f32 %v2640_v0, %v2650_v27  ;;  %v3110_v2 = vld [vmem:[#allocation17_spill] sm:$0xff] }
 0x22b   : > { %1319 = vmatprep.mubr.f32.mxu1 %v1955_v55  ;;  %v1040_v62 = vadd.f32 %v1955_v55, %v1953_v42  ;;  %v795_v8 = vmul.f32 1.442695, %v3093_v7  ;;  %v797_v4 = vmul.f32 1.442695, %v3094_v56  ;;  %v3100_v19 = vsub.f32 %v2616_v54, %v2626_v31  ;;  %v3113_v55 = vld [vmem:[#allocation15_spill] sm:$0xff] }
 0x22c   : > { %1968 = vpow2.f32 %v971_v5  ;;  %1320 = vmatmul.mubr.f32.gmra.mxu1 %v1953_v42  ;;  %v789_v26 = vmul.f32 1.442695, %v3097_v30  ;;  %v3101_v27 = vsub.f32 %v2604_v49, %v2614_v33  ;;  %v3103_v54 = vsub.f32 %v2581_v47, %v2590_v41  ;;  %v3104_v49 = vld [vmem:[#allocation20_spill] sm:$0xff]  ;;  %v3112_v42 = vld [vmem:[#allocation14_spill] sm:$0xff] }
 0x22d   : > { %v1957_v43 = vpop.eup %1956  ;;  %1970 = vpow2.f32 %v973_v9  ;;  %v783_v25 = vmul.f32 1.442695, %v3100_v19  ;;  %v3105_v33 = vsub.f32 %v2571_v51, %v3104_v49  ;;  %v3109_v41 = vld [vmem:[#allocation16_spill] sm:$0xff]  ;;  %v3114_v5 = vsub.f32 %v3112_v42, %v3113_v55  ;;  %v983_v49 = vld [vmem:[#allocation3 + $0x40] sm:$0xff] }
 0x22e   : > { %v1959_v57 = vpop.eup %1958  ;;  %1972 = vpow2.f32 %v795_v8  ;;  %v777_v31 = vmul.f32 1.442695, %v3103_v54  ;;  %v3111_v40 = vsub.f32 %v3109_v41, %v3110_v2  ;;  %v984_v19 = vld [vmem:[#allocation3 + $0x48] sm:$0xff] }
 0x22f   : > { %1324 = vmatprep.mubr.f32.mxu1 %v1959_v57  ;;  %v1043_v61 = vadd.f32 %v1959_v57, %v1957_v43  ;;  %1974 = vpow2.f32 %v797_v4  ;;  %v775_v52 = vmul.f32 1.442695, %v3105_v33  ;;  %v769_v9 = vmul.f32 1.442695, %v3114_v5  ;;  %v3115_v57 = vld [vmem:[#allocation12_spill] sm:$0xff] }
 0x230   : > { %1325 = vmatmul.mubr.f32.gmra.mxu1 %v1957_v43  ;;  %v771_v20 = vmul.f32 1.442695, %v3111_v40  ;;  %v980_v2 = vld [vmem:[#allocation3 + $0x28] sm:$0xff]  ;;  %v981_v40 = vld [vmem:[#allocation3 + $0x30] sm:$0xff] }
 0x231   : > { %v1961_v15 = vpop.eup %1960 }
 0x232   : > { %v1963_v45 = vpop.eup %1962 }
 0x233   : > { %1329 = vmatprep.mubr.f32.mxu1 %v1963_v45  ;;  %v1046_v34 = vadd.f32 %v1963_v45, %v1961_v15 }
 0x234   : > { %1330 = vmatmul.mubr.f32.gmra.mxu1 %v1961_v15  ;;  %v3116_v15 = vld [vmem:[#allocation13_spill] sm:$0xff] }
 0x235   : > { %v1965_v58 = vpop.eup %1964  ;;  %v3117_v45 = vsub.f32 %v3115_v57, %v3116_v15 }
 0x236   : > { %v1967_v59 = vpop.eup %1966 }
 0x237   : > { %1334 = vmatprep.mubr.f32.mxu1 %v1967_v59  ;;  %v1049_v46 = vadd.f32 %v1967_v59, %v1965_v58 }
 0x238   : > { %1335 = vmatmul.mubr.f32.gmra.mxu1 %v1965_v58  ;;  %v767_v58 = vmul.f32 1.442695, %v3117_v45  ;;  %v978_v45 = vld [vmem:[#allocation3 + $0x18] sm:$0xff] }
 0x239   : > { %v1969_v6 = vpop.eup %1968  ;;  %1050 = vadd.xlane.f32.xlu0 %v1049_v46 }
 0x23a   : > { %v1971_v28 = vpop.eup %1970 }
 0x23b   : > { %1339 = vmatprep.mubr.f32.mxu1 %v1971_v28  ;;  %v1052_v50 = vadd.f32 %v1971_v28, %v1969_v6  ;;  %v1973_v24 = vpop.eup %1972 }
 0x23c   : > { %1340 = vmatmul.mubr.f32.gmra.mxu1 %v1969_v6 }
 0x23d   : > { %1053 = vadd.xlane.f32.xlu1 %v1052_v50  ;;  %1047 = vadd.xlane.f32.xlu0 %v1046_v34  ;;  %v989_v34 = vld [vmem:[#allocation3 + $0x70] sm:$0xff] }
 0x241   : > { %1044 = vadd.xlane.f32.xlu1 %v1043_v61  ;;  %1041 = vadd.xlane.f32.xlu0 %v1040_v62  ;;  %v1005_v62 = vmul.f32 %v1973_v24, %v989_v34 }
 0x245   : > { %1038 = vadd.xlane.f32.xlu1 %v1037_v37  ;;  %1035 = vadd.xlane.f32.xlu0 %v1034_v22 }
 0x249   : > { %1032 = vadd.xlane.f32.xlu1 %v1031_v53  ;;  %1029 = vadd.xlane.f32.xlu0 %v1028_v14  ;;  %v988_v53 = vld [vmem:[#allocation3 + $0x68] sm:$0xff]  ;;  %v990_v14 = vld [vmem:[#allocation3 + $0x78] sm:$0xff] }
 0x24d   : > { %1026 = vadd.xlane.f32.xlu1 %v2745_v3  ;;  %1023 = vadd.xlane.f32.xlu0 %v2741_v17 }
 0x251   : > { %1020 = vadd.xlane.f32.xlu1 %v2737_v48  ;;  %1017 = vadd.xlane.f32.xlu0 %v2733_v63  ;;  %v3095_v48 = vsub.f32 %v2676_v18, %v2684_v32  ;;  %v2798_v63 = vpop.eup %1974  ;;  %v3099_v32 = vsub.f32 %v2628_v44, %v2638_v29  ;;  %v781_v18 = vmul.f32 1.442695, %v3101_v27  ;;  %v3102_v44 = vsub.f32 %v2592_v60, %v2602_v35  ;;  %v3106_v35 = vld [vmem:[#allocation18_spill] sm:$0xff] }
 0x252   : > { %v3108_v39 = vsub.f32 %v3106_v35, %v3107_v13  ;;  %v1006_v4 = vmul.f32 %v2798_v63, %v990_v14 }
 0x253   : > { %v793_v17 = vmul.f32 1.442695, %v3095_v48  ;;  %v779_v29 = vmul.f32 1.442695, %v3102_v44 }
 0x254   : > { %v773_v1 = vmul.f32 1.442695, %v3108_v39 }
 0x255   : > { %1014 = vadd.xlane.f32.xlu1 %v2729_v16  ;;  %1011 = vadd.xlane.f32.xlu0 %v2725_v36  ;;  %v3096_v16 = vsub.f32 %v2664_v12, %v2674_v23  ;;  %1976 = vpow2.f32 %v793_v17  ;;  %v785_v12 = vmul.f32 1.442695, %v3099_v32 }
 0x257   : > { %v791_v36 = vmul.f32 1.442695, %v3096_v16  ;;  %v986_v16 = vld [vmem:[#allocation3 + $0x58] sm:$0xff] }
 0x259   : > { %1008 = vadd.xlane.f32.xlu1 %v2721_v21  ;;  %1978 = vpow2.f32 %v791_v36  ;;  %v787_v21 = vmul.f32 1.442695, %v3098_v38  ;;  %v987_v36 = vld [vmem:[#allocation3 + $0x60] sm:$0xff] }
 0x25a   : > { %1980 = vpow2.f32 %v789_v26 }
 0x25b   : > { %1982 = vpow2.f32 %v787_v21 }
 0x25c   : > { %1984 = vpow2.f32 %v785_v12 }
 0x25d   : > { %1986 = vpow2.f32 %v783_v25 }
 0x25e   : > { %1988 = vpow2.f32 %v781_v18 }
 0x25f   : > { %1990 = vpow2.f32 %v779_v29 }
 0x260   : > { %1992 = vpow2.f32 %v777_v31 }
 0x261   : > { %1994 = vpow2.f32 %v775_v52 }
 0x262   : > { %v1977_v23 = vpop.eup %1976  ;;  %1996 = vpow2.f32 %v773_v1 }
 0x263   : > { %1998 = vpow2.f32 %v771_v20  ;;  %v1004_v56 = vmul.f32 %v1977_v23, %v988_v53 }
 0x264   : > { %2000 = vpow2.f32 %v769_v9 }
 0x265   : > { %2002 = vpow2.f32 %v767_v58  ;;  %v979_v58 = vld [vmem:[#allocation3 + $0x20] sm:$0xff] }
 0x266   : > { %v2807_v0 = vpop.eup %1978 }
 0x267   : > { %v1981_v3 = vpop.eup %1980  ;;  %v1003_v32 = vmul.f32 %v2807_v0, %v987_v36 }
 0x268   : > { %v2816_v10 = vpop.eup %1982  ;;  %v1002_v21 = vmul.f32 %v1981_v3, %v986_v16 }
 0x269   : > { %v2822_v11 = vpop.eup %1984 }
 0x26a   : > { %1176 = vperm.xlu1 %1906, %v1973_v24   ;;  %v2828_v60 = vpop.eup %1986  ;;  %v1000_v29 = vmul.f32 %v2822_v11, %v984_v19 }
 0x26b   : > { %1181 = vperm.xlu0 %1905, %v2798_v63   ;;  %v2834_v47 = vpop.eup %1988  ;;  %v985_v63 = vld [vmem:[#allocation3 + $0x50] sm:$0xff] }
 0x26c   : > { %v2840_v51 = vpop.eup %1990  ;;  %v1001_v54 = vmul.f32 %v2816_v10, %v985_v63 }
 0x26d   : > { %v2846_v43 = vpop.eup %1992 }
 0x26e   : > { %v2852_v59 = vpop.eup %1994  ;;  %v996_v57 = vmul.f32 %v2846_v43, %v980_v2 }
 0x26f   : > { %1171 = vperm.xlu0 %1905, %v1977_v23   ;;  %v2855_v46 = vpop.eup %1996 }
 0x270   : > { %v2858_v6 = vpop.eup %1998  ;;  %v994_v14 = vmul.f32 %v2855_v46, %v978_v45 }
 0x271   : > { %v2861_v28 = vpop.eup %2000 }
 0x272   : > { %v2864_v50 = vpop.eup %2002 }
 0x273   : > { %1166 = vperm.xlu0 %1905, %v2807_v0   ;;  %v982_v0 = vld [vmem:[#allocation3 + $0x38] sm:$0xff] }
 0x274   : > { %v998_v1 = vmul.f32 %v2834_v47, %v982_v0 }
 0x277   : > { %1161 = vperm.xlu0 %1905, %v1981_v3  }
 0x27b   : > { %1156 = vperm.xlu0 %1905, %v2816_v10  }
 0x27f   : > { %1151 = vperm.xlu0 %1905, %v2822_v11   ;;  %v999_v11 = vmul.f32 %v2828_v60, %v983_v49 }
 0x283   : > { %1146 = vperm.xlu0 %1905, %v2828_v60  }
 0x287   : > { %1141 = vperm.xlu0 %1905, %v2834_v47   ;;  %v997_v47 = vmul.f32 %v2840_v51, %v981_v40 }
 0x28b   : > { %1136 = vperm.xlu0 %1905, %v2840_v51  }
 0x28f   : > { %1131 = vperm.xlu0 %1905, %v2846_v43   ;;  %v995_v43 = vmul.f32 %v2852_v59, %v979_v58 }
 0x293   : > { %1126 = vperm.xlu0 %1905, %v2852_v59  }
 0x297   : > { %1121 = vperm.xlu0 %1905, %v2855_v46  }
 0x29b   : > { %1116 = vperm.xlu0 %1905, %v2858_v6  }
 0x29f   : > { %1111 = vperm.xlu0 %1905, %v2861_v28  }
 0x2a3   : > { %1106 = vperm.xlu0 %1905, %v2864_v50  }
 0x2c0   : > { %v2867_v61 = vpop.f32.mrf.mxu1 }
 0x2c2   : > { %v1051_v37 = vpop.xlane.xlu0 %1050  ;;  %v1268_v22 = vpop.f32.mrf.mxu1 }
 0x2c3   : > { %v1069_v7 = vadd.f32 %v1051_v37, %v1005_v62 }
 0x2c4   : > { %v2869_v8 = vpop.f32.mrf.mxu1 }
 0x2c5   : > { %1086 = vst.msk [vmem:[#allocation3 + $0x70] sm:$0xff] %vm228_vm2, %v1069_v7 }
 0x2c6   : > { %v1048_v48 = vpop.xlane.xlu0 %1047  ;;  %v1054_v17 = vpop.xlane.xlu1 %1053 }
 0x2c7   : > { %v1068_v30 = vadd.f32 %v1048_v48, %v1004_v56  ;;  %v1070_v26 = vadd.f32 %v1054_v17, %v1006_v4  ;;  %v1273_v38 = vpop.f32.mrf.mxu1  ;;  %v976_v56 = vld [vmem:[#allocation3 + $0x8] sm:$0xff]  ;;  %v977_v4 = vld [vmem:[#allocation3 + $0x10] sm:$0xff] }
 0x2c8   : > { %v993_v46 = vmul.f32 %v2858_v6, %v977_v4 }
 0x2c9   : > { %1085 = vst.msk [vmem:[#allocation3 + $0x68] sm:$0xff] %vm228_vm2, %v1068_v30  ;;  %1087 = vst.msk [vmem:[#allocation3 + $0x78] sm:$0xff] %vm228_vm2, %v1070_v26  ;;  %v2875_v24 = vpop.f32.mrf.mxu1  ;;  %v992_v26 = vmul.f32 %v2861_v28, %v976_v56 }
 0x2ca   : > { %v1042_v12 = vpop.xlane.xlu0 %1041  ;;  %v1045_v23 = vpop.xlane.xlu1 %1044 }
 0x2cb   : > { %v1066_v25 = vadd.f32 %v1042_v12, %v1002_v21  ;;  %v1067_v27 = vadd.f32 %v1045_v23, %v1003_v32  ;;  %v1278_v18 = vpop.f32.mrf.mxu1  ;;  %v975_v32 = vld [vmem:[#allocation3] sm:$0xff] }
 0x2cc   : > { %v1426_v20 = vld [vmem:[#allocation3 + $0x70] sm:$0xff]  ;;  %v991_v28 = vmul.f32 %v2864_v50, %v975_v32 }
 0x2cd   : > { %1083 = vst.msk [vmem:[#allocation3 + $0x58] sm:$0xff] %vm228_vm2, %v1066_v25  ;;  %1084 = vst.msk [vmem:[#allocation3 + $0x60] sm:$0xff] %vm228_vm2, %v1067_v27  ;;  %v2880_v44 = vpop.f32.mrf.mxu1 }
 0x2ce   : > { %v1036_v3 = vpop.xlane.xlu0 %1035  ;;  %v1039_v31 = vpop.xlane.xlu1 %1038 }
 0x2cf   : > { %v1064_v33 = vadd.f32 %v1036_v3, %v1000_v29  ;;  %v1065_v52 = vadd.f32 %v1039_v31, %v1001_v54  ;;  %v1283_v35 = vpop.f32.mrf.mxu1 }
 0x2d0   : > { %v1427_v13 = vld [vmem:[#allocation3 + $0x78] sm:$0xff]  ;;  %v1425_v34 = vld [vmem:[#allocation3 + $0x68] sm:$0xff] }
 0x2d1   : > { %1081 = vst.msk [vmem:[#allocation3 + $0x48] sm:$0xff] %vm228_vm2, %v1064_v33  ;;  %1082 = vst.msk [vmem:[#allocation3 + $0x50] sm:$0xff] %vm228_vm2, %v1065_v52  ;;  %v2886_v39 = vpop.f32.mrf.mxu1  ;;  %2004 = vrcp.f32 %v1427_v13 }
 0x2d2   : > { %v1030_v10 = vpop.xlane.xlu0 %1029  ;;  %v1033_v41 = vpop.xlane.xlu1 %1032  ;;  %2006 = vrcp.f32 %v1426_v20 }
 0x2d3   : > { %v1062_v42 = vadd.f32 %v1030_v10, %v998_v1  ;;  %v1063_v55 = vadd.f32 %v1033_v41, %v999_v11  ;;  %v1288_v5 = vpop.f32.mrf.mxu1  ;;  %2008 = vrcp.f32 %v1425_v34 }
 0x2d4   : > { %v1424_v48 = vld [vmem:[#allocation3 + $0x60] sm:$0xff]  ;;  %v1423_v12 = vld [vmem:[#allocation3 + $0x58] sm:$0xff] }
 0x2d5   : > { %1079 = vst.msk [vmem:[#allocation3 + $0x38] sm:$0xff] %vm228_vm2, %v1062_v42  ;;  %1080 = vst.msk [vmem:[#allocation3 + $0x40] sm:$0xff] %vm228_vm2, %v1063_v55  ;;  %v2892_v9 = vpop.f32.mrf.mxu1  ;;  %2010 = vrcp.f32 %v1424_v48 }
 0x2d6   : > { %v1024_v60 = vpop.xlane.xlu0 %1023  ;;  %v1027_v15 = vpop.xlane.xlu1 %1026  ;;  %2012 = vrcp.f32 %v1423_v12 }
 0x2d7   : > { %v1060_v62 = vadd.f32 %v1024_v60, %v996_v57  ;;  %v1061_v37 = vadd.f32 %v1027_v15, %v997_v47  ;;  %v1293_v22 = vpop.f32.mrf.mxu1 }
 0x2d8   : > { %v1422_v18 = vld [vmem:[#allocation3 + $0x50] sm:$0xff]  ;;  %v1421_v0 = vld [vmem:[#allocation3 + $0x48] sm:$0xff] }
 0x2d9   : > { %1077 = vst.msk [vmem:[#allocation3 + $0x28] sm:$0xff] %vm228_vm2, %v1060_v62  ;;  %1078 = vst.msk [vmem:[#allocation3 + $0x30] sm:$0xff] %vm228_vm2, %v1061_v37  ;;  %v2898_v53 = vpop.f32.mrf.mxu1  ;;  %2014 = vrcp.f32 %v1422_v18 }
 0x2da   : > { %v1018_v51 = vpop.xlane.xlu0 %1017  ;;  %v1021_v7 = vpop.xlane.xlu1 %1020  ;;  %2016 = vrcp.f32 %v1421_v0 }
 0x2db   : > { %v1058_v17 = vadd.f32 %v1018_v51, %v994_v14  ;;  %v1059_v16 = vadd.f32 %v1021_v7, %v995_v43  ;;  %v1298_v36 = vpop.f32.mrf.mxu1 }
 0x2dc   : > { %v1420_v50 = vld [vmem:[#allocation3 + $0x40] sm:$0xff]  ;;  %v1419_v10 = vld [vmem:[#allocation3 + $0x38] sm:$0xff]  ;;  %v3118_v36 = vmov 0.0  }
 0x2dd   : > { %1075 = vst.msk [vmem:[#allocation3 + $0x18] sm:$0xff] %vm228_vm2, %v1058_v17  ;;  %1076 = vst.msk [vmem:[#allocation3 + $0x20] sm:$0xff] %vm228_vm2, %v1059_v16  ;;  %v2904_v30 = vpop.f32.mrf.mxu1  ;;  %2018 = vrcp.f32 %v1420_v50  ;;  %1843 = vmatprep.mubr.msk.f32.mxu1 %vm2117_vm3, %v3118_v36 }
 0x2de   : > { %v2005_v59 = vpop.eup %2004  ;;  %v1012_v38 = vpop.xlane.xlu0 %1011 }
 0x2df   : > { %v1015_v21 = vpop.xlane.xlu1 %1014  ;;  %v1056_v23 = vadd.f32 %v1012_v38, %v992_v26  ;;  %v1303_v63 = vpop.f32.mrf.mxu1  ;;  %1537 = vperm.xlu1 %1906, %v2005_v59  }
 0x2e0   : > { %v1057_v19 = vadd.f32 %v1015_v21, %v993_v46  ;;  %v2007_v6 = vpop.eup %2006  ;;  %v1418_v20 = vld [vmem:[#allocation3 + $0x30] sm:$0xff]  ;;  %v1417_v57 = vld [vmem:[#allocation3 + $0x28] sm:$0xff]  ;;  %v1571_v63 = vld [vmem:[%s3056_s3 + $0x78] sm:$0xff] }
 0x2e1   : > { %1073 = vst.msk [vmem:[#allocation3 + $0x8] sm:$0xff] %vm228_vm2, %v1056_v23  ;;  %v2910_v25 = vpop.f32.mrf.mxu1  ;;  %v2009_v31 = vpop.eup %2008 }
 0x2e2   : > { %1074 = vst.msk [vmem:[#allocation3 + $0x10] sm:$0xff] %vm228_vm2, %v1057_v19  ;;  %v2011_v52 = vpop.eup %2010 }
 0x2e3   : > { %v1009_v27 = vpop.xlane.xlu1 %1008  ;;  %v1308_v54 = vpop.f32.mrf.mxu1  ;;  %1532 = vperm.xlu1 %1906, %v2007_v6  }
 0x2e4   : > { %v1055_v29 = vadd.f32 %v1009_v27, %v991_v28  ;;  %v2013_v11 = vpop.eup %2012  ;;  %v1416_v58 = vld [vmem:[#allocation3 + $0x20] sm:$0xff]  ;;  %v1415_v22 = vld [vmem:[#allocation3 + $0x18] sm:$0xff] }
 0x2e5   : > { %v2914_v3 = vpop.f32.mrf.mxu1 }
 0x2e6   : > { %1072 = vst.msk [vmem:[#allocation3] sm:$0xff] %vm228_vm2, %v1055_v29  ;;  %v2015_v40 = vpop.eup %2014  ;;  %v1182_v26 = vpop.permute.xlu0 %1181 }
 0x2e7   : > { %v1313_v49 = vpop.f32.mrf.mxu1  ;;  %1527 = vperm.xlu1 %1906, %v2009_v31   ;;  %v2017_v5 = vpop.eup %2016  ;;  %v1199_v23 = vmul.f32 0.0, %v1182_v26  ;;  %v1570_v31 = vld [vmem:[%s3056_s3 + $0x70] sm:$0xff] }
 0x2e8   : > { %v1413_v56 = vld [vmem:[#allocation3 + $0x8] sm:$0xff]  ;;  %v1177_v32 = vpop.permute.xlu1 %1176 }
 0x2e9   : > { %v2916_v33 = vpop.f32.mrf.mxu1  ;;  %v1414_v51 = vld [vmem:[#allocation3 + $0x10] sm:$0xff]  ;;  %v1198_v6 = vmul.f32 0.0, %v1177_v32 }
 0x2ea   : > { %v2019_v60 = vpop.eup %2018  ;;  %v1172_v46 = vpop.permute.xlu0 %1171 }
 0x2eb   : > { %v1318_v35 = vpop.f32.mrf.mxu1  ;;  %1522 = vperm.xlu1 %1906, %v2011_v52   ;;  %v1197_v49 = vmul.f32 0.0, %v1172_v46 }
 0x2ed   : > { %v1412_v13 = vld [vmem:[#allocation3] sm:$0xff]  ;;  %v2918_v1 = vpop.f32.mrf.mxu1 }
 0x2ee   : > { %2020 = vrcp.f32 %v1412_v13  ;;  %v1167_v59 = vpop.permute.xlu0 %1166 }
 0x2ef   : > { %v1323_v41 = vpop.f32.mrf.mxu1  ;;  %1517 = vperm.xlu1 %1906, %v2013_v11   ;;  %2022 = vrcp.f32 %v1419_v10  ;;  %v1196_v52 = vmul.f32 0.0, %v1167_v59  ;;  %v1569_v10 = vld [vmem:[%s3056_s3 + $0x68] sm:$0xff] }
 0x2f0   : > { %2024 = vrcp.f32 %v1418_v20 }
 0x2f1   : > { %v2920_v2 = vpop.f32.mrf.mxu1  ;;  %2026 = vrcp.f32 %v1417_v57  ;;  %v1568_v57 = vld [vmem:[%s3056_s3 + $0x60] sm:$0xff] }
 0x2f2   : > { %2028 = vrcp.f32 %v1416_v58  ;;  %v1162_v38 = vpop.permute.xlu0 %1161  ;;  %v1357_v20 = vadd.f32 %v2920_v2, %v1196_v52  ;;  %v1567_v2 = vld [vmem:[%s3056_s3 + $0x58] sm:$0xff] }
 0x2f3   : > { %v1328_v42 = vpop.f32.mrf.mxu1  ;;  %1512 = vperm.xlu1 %1906, %v2015_v40   ;;  %2030 = vrcp.f32 %v1415_v22 }
 0x2f4   : > { %2032 = vrcp.f32 %v1414_v51  ;;  %v1195_v42 = vmul.f32 0.0, %v1162_v38  ;;  %v1566_v51 = vld [vmem:[%s3056_s3 + $0x50] sm:$0xff] }
 0x2f5   : > { %v1331_v55 = vpop.f32.mrf.mxu1  ;;  %2034 = vrcp.f32 %v1413_v56 }
 0x2f6   : > { %v1157_v21 = vpop.permute.xlu0 %1156  ;;  %v1358_v35 = vadd.f32 %v1331_v55, %v1197_v49  ;;  %v1356_v58 = vadd.f32 %v2918_v1, %v1195_v42 }
 0x2f7   : > { %v1333_v47 = vpop.f32.mrf.mxu1  ;;  %1507 = vperm.xlu1 %1906, %v2017_v5  }
 0x2f9   : > { %v1336_v15 = vpop.f32.mrf.mxu1 }
 0x2fa   : > { %v1152_v12 = vpop.permute.xlu0 %1151  ;;  %v1359_v29 = vadd.f32 %v1336_v15, %v1198_v6  ;;  %v1194_v15 = vmul.f32 0.0, %v1157_v21  ;;  %v1564_v21 = vld [vmem:[%s3056_s3 + $0x40] sm:$0xff] }
 0x2fb   : > { %v2021_v45 = vpop.eup %2020  ;;  %v1338_v34 = vpop.f32.mrf.mxu1  ;;  %1502 = vperm.xlu1 %1906, %v2019_v60  }
 0x2fc   : > { %1462 = vperm.xlu0 %1905, %v2021_v45   ;;  %v2023_v37 = vpop.eup %2022 }
 0x2fd   : > { %v1341_v62 = vpop.f32.mrf.mxu1  ;;  %v2025_v43 = vpop.eup %2024 }
 0x2fe   : > { %v2027_v7 = vpop.eup %2026  ;;  %v1360_v19 = vadd.f32 %v1341_v62, %v1199_v23  ;;  %v1147_v18 = vpop.permute.xlu0 %1146 }
 0x2ff   : > { %v1343_v14 = vpop.f32.mrf.mxu1  ;;  %1497 = vperm.xlu1 %1906, %v2023_v37   ;;  %v2029_v4 = vpop.eup %2028  ;;  %v1193_v37 = vmul.f32 0.0, %v1152_v12  ;;  %v1192_v56 = vmul.f32 0.0, %v1147_v18 }
 0x300   : > { %v2031_v48 = vpop.eup %2030  ;;  %v1355_v14 = vadd.f32 %v2916_v33, %v1194_v15 }
 0x301   : > { %v2033_v17 = vpop.eup %2032  ;;  %v1353_v38 = vadd.f32 %v2910_v25, %v1192_v56 }
 0x302   : > { %v2035_v16 = vpop.eup %2034  ;;  %v1142_v11 = vpop.permute.xlu0 %1141 }
 0x303   : > { %1492 = vperm.xlu1 %1906, %v2025_v43   ;;  %v1191_v46 = vmul.f32 0.0, %v1142_v11 }
 0x306   : > { %v1137_v60 = vpop.permute.xlu0 %1136 }
 0x307   : > { %1487 = vperm.xlu1 %1906, %v2027_v7   ;;  %v1190_v12 = vmul.f32 0.0, %v1137_v60 }
 0x30a   : > { %v1132_v43 = vpop.permute.xlu0 %1131 }
 0x30b   : > { %1482 = vperm.xlu1 %1906, %v2029_v4  }
 0x30e   : > { %v1127_v26 = vpop.permute.xlu0 %1126 }
 0x30f   : > { %1477 = vperm.xlu1 %1906, %v2031_v48   ;;  %v1354_v48 = vadd.f32 %v2914_v3, %v1193_v37  ;;  %v1188_v49 = vmul.f32 0.0, %v1127_v26 }
 0x313   : > { %1472 = vperm.xlu1 %1906, %v2033_v17   ;;  %v1565_v17 = vld [vmem:[%s3056_s3 + $0x48] sm:$0xff] }
 0x317   : > { %1467 = vperm.xlu1 %1906, %v2035_v16  }
 0x35a   : > { %v1538_v28 = vpop.permute.xlu1 %1537 }
 0x35b   : > { %v1555_v27 = vmul.f32 %v1538_v28, %v1360_v19  ;;  %v1352_v19 = vadd.f32 %v2904_v30, %v1191_v46  ;;  %v1563_v28 = vld [vmem:[%s3056_s3 + $0x38] sm:$0xff] }
 0x35d   : > { %v1587_v54 = vmul.f32 %v1571_v63, %v1555_v27  ;;  %v1122_v63 = vpop.permute.xlu0 %1121  ;;  %v1189_v27 = vmul.f32 0.0, %v1132_v43 }
 0x35e   : > { %v1533_v0 = vpop.permute.xlu1 %1532  ;;  %v1187_v11 = vmul.f32 0.0, %v1122_v63 }
 0x35f   : > { %v1554_v50 = vmul.f32 %v1533_v0, %v1359_v29  ;;  %1812 = vmatpush3.xpose.msra.mxu1 %v1587_v54  ;;  %v1351_v29 = vadd.f32 %v2898_v53, %v1190_v12  ;;  %v1562_v54 = vld [vmem:[%s3056_s3 + $0x30] sm:$0xff]  ;;  %v1350_v52 = vadd.f32 %v2892_v9, %v1189_v27 }
 0x360   : > { %1813 = vmatprep.subr.mxu1 %v3118_v36 }
 0x361   : > { %v1586_v13 = vmul.f32 %v1570_v31, %v1554_v50  ;;  %v1117_v0 = vpop.permute.xlu0 %1116 }
 0x362   : > { %v1528_v41 = vpop.permute.xlu1 %1527 }
 0x363   : > { %v1553_v40 = vmul.f32 %v1528_v41, %v1358_v35  ;;  %1814 = vmatpush3.xpose.msra.mxu1 %v1586_v13  ;;  %v1561_v35 = vld [vmem:[%s3056_s3 + $0x28] sm:$0xff]  ;;  %v1349_v41 = vadd.f32 %v2886_v39, %v1188_v49 }
 0x364   : > { %1815 = vmatprep.subr.mxu1 %v3118_v36 }
 0x365   : > { %v1585_v5 = vmul.f32 %v1569_v10, %v1553_v40  ;;  %v1112_v40 = vpop.permute.xlu0 %1111 }
 0x366   : > { %v1523_v55 = vpop.permute.xlu1 %1522 }
 0x367   : > { %v1552_v47 = vmul.f32 %v1523_v55, %v1357_v20  ;;  %1816 = vmatpush3.xpose.msra.mxu1 %v1585_v5  ;;  %v1560_v20 = vld [vmem:[%s3056_s3 + $0x20] sm:$0xff]  ;;  %v1186_v5 = vmul.f32 0.0, %v1117_v0  ;;  %v1348_v55 = vadd.f32 %v2880_v44, %v1187_v11 }
 0x368   : > { %1817 = vmatprep.subr.mxu1 %v3118_v36 }
 0x369   : > { %v1584_v45 = vmul.f32 %v1568_v57, %v1552_v47  ;;  %v1559_v47 = vld [vmem:[%s3056_s3 + $0x18] sm:$0xff]  ;;  %v1107_v15 = vpop.permute.xlu0 %1106 }
 0x36a   : > { %v1518_v34 = vpop.permute.xlu1 %1517  ;;  %v1184_v44 = vmul.f32 0.0, %v1107_v15 }
 0x36b   : > { %v1551_v62 = vmul.f32 %v1518_v34, %v1356_v58  ;;  %1818 = vmatpush3.xpose.msra.mxu1 %v1584_v45  ;;  %v1185_v45 = vmul.f32 0.0, %v1112_v40  ;;  %v1558_v34 = vld [vmem:[%s3056_s3 + $0x10] sm:$0xff] }
 0x36c   : > { %1819 = vmatprep.subr.mxu1 %v3118_v36 }
 0x36d   : > { %v1583_v22 = vmul.f32 %v1567_v2, %v1551_v62  ;;  %v1347_v2 = vadd.f32 %v2875_v24, %v1186_v5 }
 0x36e   : > { %v1513_v7 = vpop.permute.xlu1 %1512 }
 0x36f   : > { %v1550_v1 = vmul.f32 %v1513_v7, %v1355_v14  ;;  %1820 = vmatpush3.xpose.msra.mxu1 %v1583_v22  ;;  %v1346_v14 = vadd.f32 %v2869_v8, %v1185_v45  ;;  %v1345_v7 = vadd.f32 %v2867_v61, %v1184_v44  ;;  %v1556_v8 = vld [vmem:[%s3056_s3] sm:$0xff] }
 0x370   : > { %1821 = vmatprep.subr.mxu1 %v3118_v36  ;;  %v1588_v61 = vld [vmem:[%s3055_s2] sm:$0xf] }
 0x371   : > { %v1582_v4 = vmul.f32 %v1566_v51, %v1550_v1  ;;  %v1557_v51 = vld [vmem:[%s3056_s3 + $0x8] sm:$0xff] }
 0x372   : > { %v1508_v16 = vpop.permute.xlu1 %1507 }
 0x373   : > { %v1549_v33 = vmul.f32 %v1508_v16, %v1354_v48  ;;  %1822 = vmatpush3.xpose.msra.mxu1 %v1582_v4 }
 0x374   : > { %1823 = vmatprep.subr.mxu1 %v3118_v36 }
 0x375   : > { %v1581_v59 = vmul.f32 %v1565_v17, %v1549_v33 }
 0x376   : > { %v1503_v32 = vpop.permute.xlu1 %1502 }
 0x377   : > { %v1548_v3 = vmul.f32 %v1503_v32, %v1353_v38  ;;  %1824 = vmatpush3.xpose.msra.mxu1 %v1581_v59  ;;  %v1463_v43 = vpop.permute.xlu0 %1462 }
 0x378   : > { %1825 = vmatprep.subr.mxu1 %v3118_v36  ;;  %v1540_v56 = vmul.f32 %v1463_v43, %v1345_v7 }
 0x379   : > { %v1580_v23 = vmul.f32 %v1564_v21, %v1548_v3 }
 0x37a   : > { %v1498_v6 = vpop.permute.xlu1 %1497  ;;  %v1572_v48 = vmul.f32 %v1556_v8, %v1540_v56 }
 0x37b   : > { %v1547_v25 = vmul.f32 %v1498_v6, %v1352_v19  ;;  %1826 = vmatpush3.xpose.msra.mxu1 %v1580_v23 }
 0x37c   : > { %1827 = vmatprep.subr.mxu1 %v3118_v36 }
 0x37d   : > { %v1579_v18 = vmul.f32 %v1563_v28, %v1547_v25 }
 0x37e   : > { %v1493_v31 = vpop.permute.xlu1 %1492 }
 0x37f   : > { %v1546_v30 = vmul.f32 %v1493_v31, %v1351_v29  ;;  %1828 = vmatpush3.xpose.msra.mxu1 %v1579_v18 }
 0x380   : > { %1829 = vmatprep.subr.mxu1 %v3118_v36 }
 0x381   : > { %v1578_v50 = vmul.f32 %v1562_v54, %v1546_v30 }
 0x382   : > { %v1488_v13 = vpop.permute.xlu1 %1487 }
 0x383   : > { %v1545_v53 = vmul.f32 %v1488_v13, %v1350_v52  ;;  %1830 = vmatpush3.xpose.msra.mxu1 %v1578_v50 }
 0x384   : > { %1831 = vmatprep.subr.mxu1 %v3118_v36 }
 0x385   : > { %v1577_v10 = vmul.f32 %v1561_v35, %v1545_v53 }
 0x386   : > { %v1483_v42 = vpop.permute.xlu1 %1482 }
 0x387   : > { %v1544_v9 = vmul.f32 %v1483_v42, %v1349_v41  ;;  %1832 = vmatpush3.xpose.msra.mxu1 %v1577_v10 }
 0x388   : > { %1833 = vmatprep.subr.mxu1 %v3118_v36 }
 0x389   : > { %v1576_v57 = vmul.f32 %v1560_v20, %v1544_v9 }
 0x38a   : > { %v1478_v60 = vpop.permute.xlu1 %1477 }
 0x38b   : > { %v1543_v39 = vmul.f32 %v1478_v60, %v1348_v55  ;;  %1834 = vmatpush3.xpose.msra.mxu1 %v1576_v57 }
 0x38c   : > { %1835 = vmatprep.subr.mxu1 %v3118_v36 }
 0x38d   : > { %v1575_v58 = vmul.f32 %v1559_v47, %v1543_v39 }
 0x38e   : > { %v1473_v62 = vpop.permute.xlu1 %1472 }
 0x38f   : > { %v1542_v37 = vmul.f32 %v1473_v62, %v1347_v2  ;;  %1836 = vmatpush3.xpose.msra.mxu1 %v1575_v58 }
 0x390   : > { %1837 = vmatprep.subr.mxu1 %v3118_v36 }
 0x391   : > { %v1574_v22 = vmul.f32 %v1558_v34, %v1542_v37 }
 0x392   : > { %v1468_v24 = vpop.permute.xlu1 %1467 }
 0x393   : > { %v1541_v1 = vmul.f32 %v1468_v24, %v1346_v14  ;;  %1838 = vmatpush3.xpose.msra.mxu1 %v1574_v22 }
 0x394   : > { %1839 = vmatprep.subr.mxu1 %v3118_v36 }
 0x395   : > { %v1573_v4 = vmul.f32 %v1557_v51, %v1541_v1 }
 0x397   : > { %1840 = vmatpush3.xpose.msra.mxu1 %v1573_v4 }
 0x398   : > { %1841 = vmatprep.subr.mxu1 %v3118_v36 }
 0x39b   : > { %1842 = vmatpush3.xpose.msra.mxu1 %v1572_v48 }
 0x39e   : > { %1844 = vmatmul.mubr.f32.vlgmr.msra.gmra.mxu1 %v1588_v61 }
 0x45e   : > { %v1655_v36 = vpop.f32.mrf.mxu1 }
 0x45f   : > { %1659 = vst [vmem:[%s213_s12] sm:$0xf] %v1655_v36 }
 0x460   : > { %v1845_v17 = vpop.f32.mrf.mxu1 }
 0x461   : > { %2049 = shalt.err (!%p2046_p5)
}
 0x462   : > { %s2050_s6 = scalar_lea.hbm %s3009_s24, 64  ;;  %s2054_s9 = scalar_lea.hbm %s3057_s4, 128 }
 0x463   : > { %p2051_p6 = scmp.ne.s32.totalorder %s3009_s24, %s2050_s6  ;;  %p2055_p10 = scmp.lt.s32.totalorder %s3009_s24, %s3057_s4 }
 0x464   : > { %p2056_p11 = scmp.lt.s32.totalorder %s2054_s9, %s2050_s6 }
 0x465   : > { %p2052_p7 = pnand %p2051_p6, %p2184_p4 }
 0x466   : > { %p2057_p12 = por %p2056_p11, %p2055_p10 }
 0x467   : > { %p2053_p9 = pneg %p2052_p7 }
 0x469   : > { %p2058_p13 = pnand %p2057_p12, %p2053_p9 }
 0x46b   : > { %2061 = shalt.err (!%p2058_p13)
}
 0x46c   : > { %1846 = dma.vmem_to_hbm [thread:$0]  (%p2184_p4), %s3004_s13, 64, %s3009_s24, %s1661_s26  }
 0x46d PF: > { %p1852_p0 = scmp.ge.s32.totalorder %s2112_s20, 2  ;;  %s1686_s12 = sand.u32 1, %s2092_s15  }
 0x46e   : > { %s1687_s14 = scalar_lea.sflag [#allocation6], %s1686_s12 }
 0x46f   : > { %p1849_p1 = pnand %p1852_p0, %p2191_p8 }
 0x471   : > { %p1850_p2 = pneg %p1849_p1 }
 0x473   : > { %2087 = dma.done.wait (%p1850_p2), %s1687_s14, 64  }
 0x474   : > { %2089 = vsyncadd (%p1850_p2), %s1687_s14, 4294967232  ;;  %s17_s20 = sadd.s32 1, %s2112_s20   ;;  %s3119_s15 = smov %s2096_s16 }
 0x475   : > { %p14_p3 = scmp.ge.s32.totalorder %s17_s20, 4   ;;  %s3120_s16 = smov %s2100_s17 }
 0x476   : > { %s3121_s17 = smov %s2197_s28  ;;  %s3122_s18 = smov %s2108_s19 }
 0x477   : > { %s3123_s19 = smov %s3125_s23  ;;  %16 = sbr.rel (!%p14_p3) target bundleno = 4 (0x4), region = 79 }
 0x47c   :  { %1692 = vsyncpa [#allocation6], 1 }
 0x47d   :  { %1694 = vsyncpa [#allocation6 + $0x1], 1 }

</bundles_post_ra>
